<compile_context>
chip_gen: v5e
topology: v5e:2x2
jax: 0.10.0
libtpu: 0.0.40
codegen_flags: <defaults>
</compile_context>

<pallas_src>
import math
import jax
import jax.numpy as jnp
from jax.experimental import pallas as pl
from jax.experimental.pallas import tpu as pltpu

# ----- small, module-consistent shapes -----
B, S, D = 2, 8, 32          # batch, words_len, feature_size
HEADS = 4
PART = D // HEADS           # feature_size / head
HB = HEADS * B              # head-batched leading dim (index = h*B + b)
FF = 64                     # PositionwiseFeedForward hidden_size
NLAYERS = 2                 # Encoder "number"
EPS = 1e-6                  # LayerNorm eps (matches module)

# Dot-operand dtype. Set to jnp.bfloat16 on v6e/v7x at realistic D for full-rate MXU
# (preferred_element_type keeps accumulation in f32). f32 keeps this toy-size check tight.
MXU_DTYPE = jnp.float32


def _layer_norm(x, w, b, *, approx=True):
    # Matches the PyTorch LayerNorm exactly: unbiased std (N-1) and division by (std + eps).
    mean = jnp.mean(x, axis=-1, keepdims=True)
    var = jnp.sum((x - mean) ** 2, axis=-1, keepdims=True) * jnp.float32(1.0 / (x.shape[-1] - 1))
    inv = pl.reciprocal(jnp.sqrt(var) + jnp.float32(EPS), approx=approx)   # EUP, not VALU divide
    return w * (x - mean) * inv + b


def _softmax_last(s):
    s = s - jnp.max(s, axis=-1, keepdims=True)
    e = jnp.exp(s)
    return e * pl.reciprocal(jnp.sum(e, axis=-1, keepdims=True), approx=True)


def encoder_kernel(x_ref, mask_ref, wqkv_ref, bqkv_ref, wo_ref, bo_ref, ln_ref,
                   w1_ref, b1_ref, w2_ref, b2_ref, lnf_ref, out_ref,
                   qhb_scr, khb_scr, vhb_scr, attn_scr):
    # 2-D activations (B*S, D) throughout.
    x = x_ref[...].astype(jnp.float32).reshape(B * S, D)

    # Additive key mask, built & fully broadcast ONCE (hoisted out of the unrolled layer loop).
    # Leading index of the head-batched layout is h*B + b, so batch = index % B.
    # NOTE: a fully-masked key row would softmax to a uniform (not zero) distribution; the
    # reference has the same behaviour, so semantics match.
    neg = jnp.where(mask_ref[...] == 0, jnp.float32(-1e9), jnp.float32(0.0))      # (B, 1, S)
    mask_add = jnp.broadcast_to(neg[None], (HEADS, B, S, S)).reshape(HB, S, S)    # (HB, S, S)

    for l in range(NLAYERS):                                # static unroll (NLAYERS is tiny)
        wqkv = wqkv_ref[l]                                  # (D, 3D), Q cols pre-scaled, MXU dtype
        bqkv = bqkv_ref[l]                                  # (1, 3D) f32 (Q part pre-scaled)
        wo = wo_ref[l]                                      # (D, D)   MXU dtype
        bo = bo_ref[l]                                      # (1, D)
        ln_l = ln_ref[l]                                    # (4, D) = ln1_w, ln1_b, ln2_w, ln2_b
        w1 = w1_ref[l]; b1 = b1_ref[l]                      # (D, FF) MXU dtype, (1, FF)
        w2 = w2_ref[l]; b2 = b2_ref[l]                      # (FF, D) MXU dtype, (1, D)

        # ---------------- sublayer 0: x + MHA(LN(x)) ----------------
        n1 = _layer_norm(x, ln_l[0:1], ln_l[1:2])           # (B*S, D)
        # One fused QKV matmul (1/sqrt(PART) already folded into the Q columns at prep time).
        qkv = jnp.dot(n1.astype(MXU_DTYPE), wqkv, preferred_element_type=jnp.float32) + bqkv

        # Relayout heads from the lane dim to a leading batch dim via VMEM scratch
        # (pure data movement; no MXU pushes).
        for h in range(HEADS):
            qhb_scr[h * B:(h + 1) * B] = \
                qkv[:, h * PART:(h + 1) * PART].reshape(B, S, PART).astype(MXU_DTYPE)
            khb_scr[h * B:(h + 1) * B] = \
                qkv[:, D + h * PART:D + (h + 1) * PART].reshape(B, S, PART).astype(MXU_DTYPE)
            vhb_scr[h * B:(h + 1) * B] = \
                qkv[:, 2 * D + h * PART:2 * D + (h + 1) * PART].reshape(B, S, PART).astype(MXU_DTYPE)

        # ONE head-batched scores matmul and ONE head-batched P@V matmul per layer.
        scores = jnp.einsum('bqp,bkp->bqk', qhb_scr[...], khb_scr[...],
                            preferred_element_type=jnp.float32) + mask_add        # (HB, S, S)
        p = _softmax_last(scores)
        # TODO(synk): attention-prob dropout omitted (identity / eval mode)
        a = jnp.einsum('bqk,bkp->bqp', p.astype(MXU_DTYPE), vhb_scr[...],
                       preferred_element_type=jnp.float32)                        # (HB, S, PART)

        # Assemble per-head outputs into a (B*S, D) scratch, then ONE Wo projection (K=D).
        for h in range(HEADS):
            attn_scr[:, h * PART:(h + 1) * PART] = \
                a[h * B:(h + 1) * B].reshape(B * S, PART).astype(MXU_DTYPE)
        x = x + jnp.dot(attn_scr[...], wo, preferred_element_type=jnp.float32) + bo

        # ---------------- sublayer 1: x + FFN(LN(x)) ----------------
        n2 = _layer_norm(x, ln_l[2:3], ln_l[3:4])
        h1 = jnp.maximum(jnp.dot(n2.astype(MXU_DTYPE), w1,
                                 preferred_element_type=jnp.float32) + b1, 0.0)
        x = x + jnp.dot(h1.astype(MXU_DTYPE), w2, preferred_element_type=jnp.float32) + b2

    # final norm after the last layer — exact reciprocal for tighter numerics
    lnf = lnf_ref[...]                                      # (2, D)
    out = _layer_norm(x, lnf[0:1], lnf[1:2], approx=False)
    out_ref[...] = out.reshape(B, S, D).astype(out_ref.dtype)


def encoder_forward(x, mask, kernel_params):
    n_in = 12
    return pl.pallas_call(
        encoder_kernel,
        out_shape=jax.ShapeDtypeStruct((B, S, D), x.dtype),
        in_specs=[pl.BlockSpec(memory_space=pltpu.MemorySpace.VMEM) for _ in range(n_in)],
        out_specs=pl.BlockSpec(memory_space=pltpu.MemorySpace.VMEM),
        scratch_shapes=[
            pltpu.VMEM((HB, S, PART), MXU_DTYPE),   # Q, head-batched
            pltpu.VMEM((HB, S, PART), MXU_DTYPE),   # K, head-batched
            pltpu.VMEM((HB, S, PART), MXU_DTYPE),   # V, head-batched
            pltpu.VMEM((B * S, D), MXU_DTYPE),      # concatenated attention output
        ],
    )(x, mask, *kernel_params)


# ------------------- one-time parameter prep (outside the kernel / per-call wrapper) ---------
def prepare_kernel_params(params):
    """Fold 1/sqrt(PART) into the Q columns of the fused QKV weight/bias and cast the matmul
    weights to MXU_DTYPE once. Biases and LayerNorm params stay f32 (VPU/EUP math stays f32)."""
    wqkv, bqkv, wo, bo, ln, w1, b1, w2, b2, lnf = params
    inv_sqrt = 1.0 / math.sqrt(PART)
    wqkv = wqkv.at[:, :, :D].multiply(inv_sqrt)
    bqkv = bqkv.at[:, :, :D].multiply(inv_sqrt)
    return (wqkv.astype(MXU_DTYPE), bqkv, wo.astype(MXU_DTYPE), bo, ln,
            w1.astype(MXU_DTYPE), b1, w2.astype(MXU_DTYPE), b2, lnf)


# ------------------- pure-JAX reference (for correctness; uses unmodified params) -------------
def encoder_reference(x, mask, params):
    wqkv, bqkv, wo, bo, ln, w1, b1, w2, b2, lnf = params

    def layer_norm(y, w, b):
        mean = y.mean(-1, keepdims=True)
        var = ((y - mean) ** 2).sum(-1, keepdims=True) / (y.shape[-1] - 1)
        return w * (y - mean) / (jnp.sqrt(var) + EPS) + b

    xf = x.astype(jnp.float32)
    m4 = mask[:, None]                                           # (B,1,1,S)
    for l in range(wqkv.shape[0]):
        n1 = layer_norm(xf, ln[l, 0], ln[l, 1])
        qkv = n1 @ wqkv[l] + bqkv[l, 0]
        q, k, v = qkv[..., :D], qkv[..., D:2 * D], qkv[..., 2 * D:]
        split = lambda t: t.reshape(B, S, HEADS, PART).transpose(0, 2, 1, 3)
        qh, kh, vh = split(q), split(k), split(v)
        scores = jnp.einsum('bhsp,bhtp->bhst', qh, kh) / math.sqrt(PART)
        scores = jnp.where(m4 == 0, -1e9, scores)
        p = jax.nn.softmax(scores, axis=-1)
        a = jnp.einsum('bhst,bhtp->bhsp', p, vh).transpose(0, 2, 1, 3).reshape(B, S, D)
        xf = xf + (a @ wo[l] + bo[l, 0])
        n2 = layer_norm(xf, ln[l, 2], ln[l, 3])
        h1 = jax.nn.relu(n2 @ w1[l] + b1[l, 0])
        xf = xf + (h1 @ w2[l] + b2[l, 0])
    return layer_norm(xf, lnf[0], lnf[1])


def init_params(key):
    ks = jax.random.split(key, 8)
    scale_d = 1.0 / math.sqrt(D)
    scale_f = 1.0 / math.sqrt(FF)
    wqkv = jax.random.uniform(ks[0], (NLAYERS, D, 3 * D), jnp.float32, -scale_d, scale_d)
    bqkv = jax.random.uniform(ks[1], (NLAYERS, 1, 3 * D), jnp.float32, -scale_d, scale_d)
    wo = jax.random.uniform(ks[2], (NLAYERS, D, D), jnp.float32, -scale_d, scale_d)
    bo = jax.random.uniform(ks[3], (NLAYERS, 1, D), jnp.float32, -scale_d, scale_d)
    # LayerNorm params initialized like the module: w = ones, bias = zeros
    ln = jnp.stack([jnp.ones((NLAYERS, D)), jnp.zeros((NLAYERS, D)),
                    jnp.ones((NLAYERS, D)), jnp.zeros((NLAYERS, D))], axis=1).astype(jnp.float32)
    w1 = jax.random.uniform(ks[4], (NLAYERS, D, FF), jnp.float32, -scale_d, scale_d)
    b1 = jax.random.uniform(ks[5], (NLAYERS, 1, FF), jnp.float32, -scale_d, scale_d)
    w2 = jax.random.uniform(ks[6], (NLAYERS, FF, D), jnp.float32, -scale_f, scale_f)
    b2 = jax.random.uniform(ks[7], (NLAYERS, 1, D), jnp.float32, -scale_f, scale_f)
    lnf = jnp.stack([jnp.ones((D,)), jnp.zeros((D,))], axis=0).astype(jnp.float32)
    return (wqkv, bqkv, wo, bo, ln, w1, b1, w2, b2, lnf)


if __name__ == "__main__":
    key = jax.random.PRNGKey(0)
    kx, kp = jax.random.split(key)
    x = jax.random.normal(kx, (B, S, D), jnp.float32)
    # (B, 1, S) key mask like the module docstring; zero the last 2 keys of batch 1
    # so the masking path is actually exercised.
    mask = jnp.ones((B, 1, S), jnp.float32).at[1, 0, S - 2:].set(0.0)
    params = init_params(kp)
    kernel_params = prepare_kernel_params(params)   # one-time prep, not per-call work

    out = jax.block_until_ready(encoder_forward(x, mask, kernel_params))
    ref = jax.block_until_ready(encoder_reference(x, mask, params))

    assert out.shape == (B, S, D) and out.dtype == jnp.float32
    assert bool(jnp.all(jnp.isfinite(out)))
    assert bool(jnp.allclose(out, ref, rtol=1e-2, atol=1e-2)), \
        f"max abs diff = {float(jnp.max(jnp.abs(out - ref)))}"
    print("KERNEL_OK")
</pallas_src>

<mosaic_0001>
module attributes {stable_mosaic.version = 11 : i64} {
  func.func @encoder_kernel(%arg0: memref<2x8x32xf32, #tpu.memory_space<vmem>>, %arg1: memref<2x1x8xf32, #tpu.memory_space<vmem>>, %arg2: memref<2x32x96xf32, #tpu.memory_space<vmem>>, %arg3: memref<2x1x96xf32, #tpu.memory_space<vmem>>, %arg4: memref<2x32x32xf32, #tpu.memory_space<vmem>>, %arg5: memref<2x1x32xf32, #tpu.memory_space<vmem>>, %arg6: memref<2x4x32xf32, #tpu.memory_space<vmem>>, %arg7: memref<2x32x64xf32, #tpu.memory_space<vmem>>, %arg8: memref<2x1x64xf32, #tpu.memory_space<vmem>>, %arg9: memref<2x64x32xf32, #tpu.memory_space<vmem>>, %arg10: memref<2x1x32xf32, #tpu.memory_space<vmem>>, %arg11: memref<2x32xf32, #tpu.memory_space<vmem>>, %arg12: memref<2x8x32xf32, #tpu.memory_space<vmem>>, %arg13: memref<8x8x8xf32, #tpu.memory_space<vmem>>, %arg14: memref<8x8x8xf32, #tpu.memory_space<vmem>>, %arg15: memref<8x8x8xf32, #tpu.memory_space<vmem>>, %arg16: memref<16x32xf32, #tpu.memory_space<vmem>>) attributes {dimension_semantics = [], scalar_prefetch = 0 : i64, scratch_operands = 4 : i64, tpu.core_type = #tpu.core_type<tc>} {
    %c0 = arith.constant 0 : index
    %c0_0 = arith.constant 0 : index
    %c0_1 = arith.constant 0 : index
    %0 = vector.load %arg0[%c0, %c0_0, %c0_1] : memref<2x8x32xf32, #tpu.memory_space<vmem>>, vector<2x8x32xf32>
    %1 = vector.shape_cast %0 : vector<2x8x32xf32> to vector<16x32xf32>
    %c0_2 = arith.constant 0 : index
    %c0_3 = arith.constant 0 : index
    %c0_4 = arith.constant 0 : index
    %2 = vector.load %arg1[%c0_2, %c0_3, %c0_4] : memref<2x1x8xf32, #tpu.memory_space<vmem>>, vector<2x1x8xf32>
    %cst = arith.constant 0.000000e+00 : f32
    %3 = vector.broadcast %cst : f32 to vector<2x1x8xf32>
    %4 = arith.cmpf oeq, %2, %3 : vector<2x1x8xf32>
    %cst_5 = arith.constant -1.000000e+09 : f32
    %cst_6 = arith.constant 0.000000e+00 : f32
    %5 = vector.broadcast %cst_5 : f32 to vector<2x1x8xf32>
    %6 = vector.broadcast %cst_6 : f32 to vector<2x1x8xf32>
    %7 = arith.select %4, %5, %6 : vector<2x1x8xi1>, vector<2x1x8xf32>
    %8 = vector.shape_cast %7 : vector<2x1x8xf32> to vector<1x2x1x8xf32>
    %9 = vector.shape_cast %8 : vector<1x2x1x8xf32> to vector<1x2x1x8xf32>
    %10 = vector.broadcast %9 : vector<1x2x1x8xf32> to vector<4x2x8x8xf32>
    %11 = vector.shape_cast %10 : vector<4x2x8x8xf32> to vector<8x8x8xf32>
    %c0_7 = arith.constant 0 : index
    %c0_8 = arith.constant 0 : index
    %c0_9 = arith.constant 0 : index
    %12 = vector.load %arg2[%c0_7, %c0_8, %c0_9] : memref<2x32x96xf32, #tpu.memory_space<vmem>>, vector<1x32x96xf32>
    %13 = vector.shape_cast %12 : vector<1x32x96xf32> to vector<32x96xf32>
    %c0_10 = arith.constant 0 : index
    %c0_11 = arith.constant 0 : index
    %c0_12 = arith.constant 0 : index
    %14 = vector.load %arg3[%c0_10, %c0_11, %c0_12] : memref<2x1x96xf32, #tpu.memory_space<vmem>>, vector<1x1x96xf32>
    %15 = vector.shape_cast %14 : vector<1x1x96xf32> to vector<1x96xf32>
    %c0_13 = arith.constant 0 : index
    %c0_14 = arith.constant 0 : index
    %c0_15 = arith.constant 0 : index
    %16 = vector.load %arg4[%c0_13, %c0_14, %c0_15] : memref<2x32x32xf32, #tpu.memory_space<vmem>>, vector<1x32x32xf32>
    %17 = vector.shape_cast %16 : vector<1x32x32xf32> to vector<32x32xf32>
    %c0_16 = arith.constant 0 : index
    %c0_17 = arith.constant 0 : index
    %c0_18 = arith.constant 0 : index
    %18 = vector.load %arg5[%c0_16, %c0_17, %c0_18] : memref<2x1x32xf32, #tpu.memory_space<vmem>>, vector<1x1x32xf32>
    %19 = vector.shape_cast %18 : vector<1x1x32xf32> to vector<1x32xf32>
    %c0_19 = arith.constant 0 : index
    %c0_20 = arith.constant 0 : index
    %c0_21 = arith.constant 0 : index
    %20 = vector.load %arg6[%c0_19, %c0_20, %c0_21] : memref<2x4x32xf32, #tpu.memory_space<vmem>>, vector<1x4x32xf32>
    %21 = vector.shape_cast %20 : vector<1x4x32xf32> to vector<4x32xf32>
    %c0_22 = arith.constant 0 : index
    %c0_23 = arith.constant 0 : index
    %c0_24 = arith.constant 0 : index
    %22 = vector.load %arg7[%c0_22, %c0_23, %c0_24] : memref<2x32x64xf32, #tpu.memory_space<vmem>>, vector<1x32x64xf32>
    %23 = vector.shape_cast %22 : vector<1x32x64xf32> to vector<32x64xf32>
    %c0_25 = arith.constant 0 : index
    %c0_26 = arith.constant 0 : index
    %c0_27 = arith.constant 0 : index
    %24 = vector.load %arg8[%c0_25, %c0_26, %c0_27] : memref<2x1x64xf32, #tpu.memory_space<vmem>>, vector<1x1x64xf32>
    %25 = vector.shape_cast %24 : vector<1x1x64xf32> to vector<1x64xf32>
    %c0_28 = arith.constant 0 : index
    %c0_29 = arith.constant 0 : index
    %c0_30 = arith.constant 0 : index
    %26 = vector.load %arg9[%c0_28, %c0_29, %c0_30] : memref<2x64x32xf32, #tpu.memory_space<vmem>>, vector<1x64x32xf32>
    %27 = vector.shape_cast %26 : vector<1x64x32xf32> to vector<64x32xf32>
    %c0_31 = arith.constant 0 : index
    %c0_32 = arith.constant 0 : index
    %c0_33 = arith.constant 0 : index
    %28 = vector.load %arg10[%c0_31, %c0_32, %c0_33] : memref<2x1x32xf32, #tpu.memory_space<vmem>>, vector<1x1x32xf32>
    %29 = vector.shape_cast %28 : vector<1x1x32xf32> to vector<1x32xf32>
    %30 = vector.extract_strided_slice %21 {offsets = [0, 0], sizes = [1, 32], strides = [1, 1]} : vector<4x32xf32> to vector<1x32xf32>
    %31 = vector.extract_strided_slice %21 {offsets = [1, 0], sizes = [1, 32], strides = [1, 1]} : vector<4x32xf32> to vector<1x32xf32>
    %cst_34 = arith.constant dense<0.000000e+00> : vector<16xf32>
    %32 = vector.multi_reduction <add>, %1, %cst_34 [1] : vector<16x32xf32> to vector<16xf32>
    %33 = vector.shape_cast %32 : vector<16xf32> to vector<16x1xf32>
    %cst_35 = arith.constant 3.200000e+01 : f32
    %34 = vector.broadcast %cst_35 : f32 to vector<16x1xf32>
    %35 = arith.divf %33, %34 : vector<16x1xf32>
    %36 = vector.broadcast %35 : vector<16x1xf32> to vector<16x32xf32>
    %37 = arith.subf %1, %36 : vector<16x32xf32>
    %38 = arith.mulf %37, %37 : vector<16x32xf32>
    %cst_36 = arith.constant dense<0.000000e+00> : vector<16xf32>
    %39 = vector.multi_reduction <add>, %38, %cst_36 [1] : vector<16x32xf32> to vector<16xf32>
    %40 = vector.shape_cast %39 : vector<16xf32> to vector<16x1xf32>
    %cst_37 = arith.constant 0.0322580636 : f32
    %41 = vector.broadcast %cst_37 : f32 to vector<16x1xf32>
    %42 = arith.mulf %40, %41 : vector<16x1xf32>
    %43 = math.sqrt %42 : vector<16x1xf32>
    %cst_38 = arith.constant 9.99999997E-7 : f32
    %44 = vector.broadcast %cst_38 : f32 to vector<16x1xf32>
    %45 = arith.addf %43, %44 : vector<16x1xf32>
    %46 = tpu.reciprocal %45 {approx = true} : vector<16x1xf32> -> vector<16x1xf32>
    %47 = vector.broadcast %35 : vector<16x1xf32> to vector<16x32xf32>
    %48 = arith.subf %1, %47 : vector<16x32xf32>
    %49 = vector.broadcast %30 : vector<1x32xf32> to vector<16x32xf32>
    %50 = arith.mulf %49, %48 : vector<16x32xf32>
    %51 = vector.broadcast %46 : vector<16x1xf32> to vector<16x32xf32>
    %52 = arith.mulf %50, %51 : vector<16x32xf32>
    %53 = vector.broadcast %31 : vector<1x32xf32> to vector<16x32xf32>
    %54 = arith.addf %52, %53 : vector<16x32xf32>
    %cst_39 = arith.constant dense<0.000000e+00> : vector<16x96xf32>
    %55 = tpu.matmul %54, %13, %cst_39 {dimension_numbers = #tpu.dot_dimension_numbers<[1], [0], [0], [1], [0, 0, 1, 1], [], []>} : vector<16x32xf32>, vector<32x96xf32>, vector<16x96xf32> -> vector<16x96xf32>
    %56 = vector.broadcast %15 : vector<1x96xf32> to vector<16x96xf32>
    %57 = arith.addf %55, %56 : vector<16x96xf32>
    %58 = vector.extract_strided_slice %57 {offsets = [0, 0], sizes = [16, 8], strides = [1, 1]} : vector<16x96xf32> to vector<16x8xf32>
    %59 = vector.shape_cast %58 : vector<16x8xf32> to vector<2x8x8xf32>
    %c0_40 = arith.constant 0 : index
    %c0_41 = arith.constant 0 : index
    %c0_42 = arith.constant 0 : index
    %60 = vector.load %arg13[%c0_40, %c0_41, %c0_42] : memref<8x8x8xf32, #tpu.memory_space<vmem>>, vector<2x8x8xf32>
    tpu.vector_store %arg13[%c0_40, %c0_41, %c0_42], %59 {strides = array<i32>} : memref<8x8x8xf32, #tpu.memory_space<vmem>>, vector<2x8x8xf32>,
    %61 = vector.extract_strided_slice %57 {offsets = [0, 32], sizes = [16, 8], strides = [1, 1]} : vector<16x96xf32> to vector<16x8xf32>
    %62 = vector.shape_cast %61 : vector<16x8xf32> to vector<2x8x8xf32>
    %c0_43 = arith.constant 0 : index
    %c0_44 = arith.constant 0 : index
    %c0_45 = arith.constant 0 : index
    %63 = vector.load %arg14[%c0_43, %c0_44, %c0_45] : memref<8x8x8xf32, #tpu.memory_space<vmem>>, vector<2x8x8xf32>
    tpu.vector_store %arg14[%c0_43, %c0_44, %c0_45], %62 {strides = array<i32>} : memref<8x8x8xf32, #tpu.memory_space<vmem>>, vector<2x8x8xf32>,
    %64 = vector.extract_strided_slice %57 {offsets = [0, 64], sizes = [16, 8], strides = [1, 1]} : vector<16x96xf32> to vector<16x8xf32>
    %65 = vector.shape_cast %64 : vector<16x8xf32> to vector<2x8x8xf32>
    %c0_46 = arith.constant 0 : index
    %c0_47 = arith.constant 0 : index
    %c0_48 = arith.constant 0 : index
    %66 = vector.load %arg15[%c0_46, %c0_47, %c0_48] : memref<8x8x8xf32, #tpu.memory_space<vmem>>, vector<2x8x8xf32>
    tpu.vector_store %arg15[%c0_46, %c0_47, %c0_48], %65 {strides = array<i32>} : memref<8x8x8xf32, #tpu.memory_space<vmem>>, vector<2x8x8xf32>,
    %67 = vector.extract_strided_slice %57 {offsets = [0, 8], sizes = [16, 8], strides = [1, 1]} : vector<16x96xf32> to vector<16x8xf32>
    %68 = vector.shape_cast %67 : vector<16x8xf32> to vector<2x8x8xf32>
    %c2 = arith.constant 2 : index
    %c0_49 = arith.constant 0 : index
    %c0_50 = arith.constant 0 : index
    %69 = vector.load %arg13[%c2, %c0_49, %c0_50] : memref<8x8x8xf32, #tpu.memory_space<vmem>>, vector<2x8x8xf32>
    tpu.vector_store %arg13[%c2, %c0_49, %c0_50], %68 {strides = array<i32>} : memref<8x8x8xf32, #tpu.memory_space<vmem>>, vector<2x8x8xf32>,
    %70 = vector.extract_strided_slice %57 {offsets = [0, 40], sizes = [16, 8], strides = [1, 1]} : vector<16x96xf32> to vector<16x8xf32>
    %71 = vector.shape_cast %70 : vector<16x8xf32> to vector<2x8x8xf32>
    %c2_51 = arith.constant 2 : index
    %c0_52 = arith.constant 0 : index
    %c0_53 = arith.constant 0 : index
    %72 = vector.load %arg14[%c2_51, %c0_52, %c0_53] : memref<8x8x8xf32, #tpu.memory_space<vmem>>, vector<2x8x8xf32>
    tpu.vector_store %arg14[%c2_51, %c0_52, %c0_53], %71 {strides = array<i32>} : memref<8x8x8xf32, #tpu.memory_space<vmem>>, vector<2x8x8xf32>,
    %73 = vector.extract_strided_slice %57 {offsets = [0, 72], sizes = [16, 8], strides = [1, 1]} : vector<16x96xf32> to vector<16x8xf32>
    %74 = vector.shape_cast %73 : vector<16x8xf32> to vector<2x8x8xf32>
    %c2_54 = arith.constant 2 : index
    %c0_55 = arith.constant 0 : index
    %c0_56 = arith.constant 0 : index
    %75 = vector.load %arg15[%c2_54, %c0_55, %c0_56] : memref<8x8x8xf32, #tpu.memory_space<vmem>>, vector<2x8x8xf32>
    tpu.vector_store %arg15[%c2_54, %c0_55, %c0_56], %74 {strides = array<i32>} : memref<8x8x8xf32, #tpu.memory_space<vmem>>, vector<2x8x8xf32>,
    %76 = vector.extract_strided_slice %57 {offsets = [0, 16], sizes = [16, 8], strides = [1, 1]} : vector<16x96xf32> to vector<16x8xf32>
    %77 = vector.shape_cast %76 : vector<16x8xf32> to vector<2x8x8xf32>
    %c4 = arith.constant 4 : index
    %c0_57 = arith.constant 0 : index
    %c0_58 = arith.constant 0 : index
    %78 = vector.load %arg13[%c4, %c0_57, %c0_58] : memref<8x8x8xf32, #tpu.memory_space<vmem>>, vector<2x8x8xf32>
    tpu.vector_store %arg13[%c4, %c0_57, %c0_58], %77 {strides = array<i32>} : memref<8x8x8xf32, #tpu.memory_space<vmem>>, vector<2x8x8xf32>,
    %79 = vector.extract_strided_slice %57 {offsets = [0, 48], sizes = [16, 8], strides = [1, 1]} : vector<16x96xf32> to vector<16x8xf32>
    %80 = vector.shape_cast %79 : vector<16x8xf32> to vector<2x8x8xf32>
    %c4_59 = arith.constant 4 : index
    %c0_60 = arith.constant 0 : index
    %c0_61 = arith.constant 0 : index
    %81 = vector.load %arg14[%c4_59, %c0_60, %c0_61] : memref<8x8x8xf32, #tpu.memory_space<vmem>>, vector<2x8x8xf32>
    tpu.vector_store %arg14[%c4_59, %c0_60, %c0_61], %80 {strides = array<i32>} : memref<8x8x8xf32, #tpu.memory_space<vmem>>, vector<2x8x8xf32>,
    %82 = vector.extract_strided_slice %57 {offsets = [0, 80], sizes = [16, 8], strides = [1, 1]} : vector<16x96xf32> to vector<16x8xf32>
    %83 = vector.shape_cast %82 : vector<16x8xf32> to vector<2x8x8xf32>
    %c4_62 = arith.constant 4 : index
    %c0_63 = arith.constant 0 : index
    %c0_64 = arith.constant 0 : index
    %84 = vector.load %arg15[%c4_62, %c0_63, %c0_64] : memref<8x8x8xf32, #tpu.memory_space<vmem>>, vector<2x8x8xf32>
    tpu.vector_store %arg15[%c4_62, %c0_63, %c0_64], %83 {strides = array<i32>} : memref<8x8x8xf32, #tpu.memory_space<vmem>>, vector<2x8x8xf32>,
    %85 = vector.extract_strided_slice %57 {offsets = [0, 24], sizes = [16, 8], strides = [1, 1]} : vector<16x96xf32> to vector<16x8xf32>
    %86 = vector.shape_cast %85 : vector<16x8xf32> to vector<2x8x8xf32>
    %c6 = arith.constant 6 : index
    %c0_65 = arith.constant 0 : index
    %c0_66 = arith.constant 0 : index
    %87 = vector.load %arg13[%c6, %c0_65, %c0_66] : memref<8x8x8xf32, #tpu.memory_space<vmem>>, vector<2x8x8xf32>
    tpu.vector_store %arg13[%c6, %c0_65, %c0_66], %86 {strides = array<i32>} : memref<8x8x8xf32, #tpu.memory_space<vmem>>, vector<2x8x8xf32>,
    %88 = vector.extract_strided_slice %57 {offsets = [0, 56], sizes = [16, 8], strides = [1, 1]} : vector<16x96xf32> to vector<16x8xf32>
    %89 = vector.shape_cast %88 : vector<16x8xf32> to vector<2x8x8xf32>
    %c6_67 = arith.constant 6 : index
    %c0_68 = arith.constant 0 : index
    %c0_69 = arith.constant 0 : index
    %90 = vector.load %arg14[%c6_67, %c0_68, %c0_69] : memref<8x8x8xf32, #tpu.memory_space<vmem>>, vector<2x8x8xf32>
    tpu.vector_store %arg14[%c6_67, %c0_68, %c0_69], %89 {strides = array<i32>} : memref<8x8x8xf32, #tpu.memory_space<vmem>>, vector<2x8x8xf32>,
    %91 = vector.extract_strided_slice %57 {offsets = [0, 88], sizes = [16, 8], strides = [1, 1]} : vector<16x96xf32> to vector<16x8xf32>
    %92 = vector.shape_cast %91 : vector<16x8xf32> to vector<2x8x8xf32>
    %c6_70 = arith.constant 6 : index
    %c0_71 = arith.constant 0 : index
    %c0_72 = arith.constant 0 : index
    %93 = vector.load %arg15[%c6_70, %c0_71, %c0_72] : memref<8x8x8xf32, #tpu.memory_space<vmem>>, vector<2x8x8xf32>
    tpu.vector_store %arg15[%c6_70, %c0_71, %c0_72], %92 {strides = array<i32>} : memref<8x8x8xf32, #tpu.memory_space<vmem>>, vector<2x8x8xf32>,
    %c0_73 = arith.constant 0 : index
    %c0_74 = arith.constant 0 : index
    %c0_75 = arith.constant 0 : index
    %94 = vector.load %arg13[%c0_73, %c0_74, %c0_75] : memref<8x8x8xf32, #tpu.memory_space<vmem>>, vector<8x8x8xf32>
    %c0_76 = arith.constant 0 : index
    %c0_77 = arith.constant 0 : index
    %c0_78 = arith.constant 0 : index
    %95 = vector.load %arg14[%c0_76, %c0_77, %c0_78] : memref<8x8x8xf32, #tpu.memory_space<vmem>>, vector<8x8x8xf32>
    "tpu.trace_start"() <{level = 10 : i32, message = "bqp,bkp->bqk"}> : () -> ()
    %cst_79 = arith.constant dense<0.000000e+00> : vector<8x8x8xf32>
    %96 = tpu.matmul %94, %95, %cst_79 {dimension_numbers = #tpu.dot_dimension_numbers<[2], [2], [1], [1], [0, 0, 0, 1, 1, 1], [0], [0]>} : vector<8x8x8xf32>, vector<8x8x8xf32>, vector<8x8x8xf32> -> vector<8x8x8xf32>
    "tpu.trace_stop"() : () -> ()
    %97 = arith.addf %96, %11 : vector<8x8x8xf32>
    %cst_80 = arith.constant dense<0xFF800000> : vector<8x8xf32>
    %98 = vector.multi_reduction <maximumf>, %97, %cst_80 [2] : vector<8x8x8xf32> to vector<8x8xf32>
    %99 = vector.shape_cast %98 : vector<8x8xf32> to vector<8x8x1xf32>
    %100 = vector.broadcast %99 : vector<8x8x1xf32> to vector<8x8x8xf32>
    %101 = arith.subf %97, %100 : vector<8x8x8xf32>
    %102 = math.exp %101 : vector<8x8x8xf32>
    %cst_81 = arith.constant dense<0.000000e+00> : vector<8x8xf32>
    %103 = vector.multi_reduction <add>, %102, %cst_81 [2] : vector<8x8x8xf32> to vector<8x8xf32>
    %104 = vector.shape_cast %103 : vector<8x8xf32> to vector<8x8x1xf32>
    %105 = tpu.reciprocal %104 {approx = true} : vector<8x8x1xf32> -> vector<8x8x1xf32>
    %106 = vector.broadcast %105 : vector<8x8x1xf32> to vector<8x8x8xf32>
    %107 = arith.mulf %102, %106 : vector<8x8x8xf32>
    %c0_82 = arith.constant 0 : index
    %c0_83 = arith.constant 0 : index
    %c0_84 = arith.constant 0 : index
    %108 = vector.load %arg15[%c0_82, %c0_83, %c0_84] : memref<8x8x8xf32, #tpu.memory_space<vmem>>, vector<8x8x8xf32>
    "tpu.trace_start"() <{level = 10 : i32, message = "bqk,bkp->bqp"}> : () -> ()
    %cst_85 = arith.constant dense<0.000000e+00> : vector<8x8x8xf32>
    %109 = tpu.matmul %107, %108, %cst_85 {dimension_numbers = #tpu.dot_dimension_numbers<[2], [1], [1], [2], [0, 0, 0, 1, 1, 2], [0], [0]>} : vector<8x8x8xf32>, vector<8x8x8xf32>, vector<8x8x8xf32> -> vector<8x8x8xf32>
    "tpu.trace_stop"() : () -> ()
    %110 = vector.extract_strided_slice %109 {offsets = [0, 0, 0], sizes = [2, 8, 8], strides = [1, 1, 1]} : vector<8x8x8xf32> to vector<2x8x8xf32>
    %111 = vector.shape_cast %110 : vector<2x8x8xf32> to vector<16x8xf32>
    %c0_86 = arith.constant 0 : index
    %c0_87 = arith.constant 0 : index
    %112 = vector.load %arg16[%c0_86, %c0_87] : memref<16x32xf32, #tpu.memory_space<vmem>>, vector<16x8xf32>
    tpu.vector_store %arg16[%c0_86, %c0_87], %111 {strides = array<i32>} : memref<16x32xf32, #tpu.memory_space<vmem>>, vector<16x8xf32>,
    %113 = vector.extract_strided_slice %109 {offsets = [2, 0, 0], sizes = [2, 8, 8], strides = [1, 1, 1]} : vector<8x8x8xf32> to vector<2x8x8xf32>
    %114 = vector.shape_cast %113 : vector<2x8x8xf32> to vector<16x8xf32>
    %c0_88 = arith.constant 0 : index
    %c8 = arith.constant 8 : index
    %115 = vector.load %arg16[%c0_88, %c8] : memref<16x32xf32, #tpu.memory_space<vmem>>, vector<16x8xf32>
    tpu.vector_store %arg16[%c0_88, %c8], %114 {strides = array<i32>} : memref<16x32xf32, #tpu.memory_space<vmem>>, vector<16x8xf32>,
    %116 = vector.extract_strided_slice %109 {offsets = [4, 0, 0], sizes = [2, 8, 8], strides = [1, 1, 1]} : vector<8x8x8xf32> to vector<2x8x8xf32>
    %117 = vector.shape_cast %116 : vector<2x8x8xf32> to vector<16x8xf32>
    %c0_89 = arith.constant 0 : index
    %c16 = arith.constant 16 : index
    %118 = vector.load %arg16[%c0_89, %c16] : memref<16x32xf32, #tpu.memory_space<vmem>>, vector<16x8xf32>
    tpu.vector_store %arg16[%c0_89, %c16], %117 {strides = array<i32>} : memref<16x32xf32, #tpu.memory_space<vmem>>, vector<16x8xf32>,
    %119 = vector.extract_strided_slice %109 {offsets = [6, 0, 0], sizes = [2, 8, 8], strides = [1, 1, 1]} : vector<8x8x8xf32> to vector<2x8x8xf32>
    %120 = vector.shape_cast %119 : vector<2x8x8xf32> to vector<16x8xf32>
    %c0_90 = arith.constant 0 : index
    %c24 = arith.constant 24 : index
    %121 = vector.load %arg16[%c0_90, %c24] : memref<16x32xf32, #tpu.memory_space<vmem>>, vector<16x8xf32>
    tpu.vector_store %arg16[%c0_90, %c24], %120 {strides = array<i32>} : memref<16x32xf32, #tpu.memory_space<vmem>>, vector<16x8xf32>,
    %c0_91 = arith.constant 0 : index
    %c0_92 = arith.constant 0 : index
    %122 = vector.load %arg16[%c0_91, %c0_92] : memref<16x32xf32, #tpu.memory_space<vmem>>, vector<16x32xf32>
    %cst_93 = arith.constant dense<0.000000e+00> : vector<16x32xf32>
    %123 = tpu.matmul %122, %17, %cst_93 {dimension_numbers = #tpu.dot_dimension_numbers<[1], [0], [0], [1], [0, 0, 1, 1], [], []>} : vector<16x32xf32>, vector<32x32xf32>, vector<16x32xf32> -> vector<16x32xf32>
    %124 = arith.addf %1, %123 : vector<16x32xf32>
    %125 = vector.broadcast %19 : vector<1x32xf32> to vector<16x32xf32>
    %126 = arith.addf %124, %125 : vector<16x32xf32>
    %127 = vector.extract_strided_slice %21 {offsets = [2, 0], sizes = [1, 32], strides = [1, 1]} : vector<4x32xf32> to vector<1x32xf32>
    %128 = vector.extract_strided_slice %21 {offsets = [3, 0], sizes = [1, 32], strides = [1, 1]} : vector<4x32xf32> to vector<1x32xf32>
    %cst_94 = arith.constant dense<0.000000e+00> : vector<16xf32>
    %129 = vector.multi_reduction <add>, %126, %cst_94 [1] : vector<16x32xf32> to vector<16xf32>
    %130 = vector.shape_cast %129 : vector<16xf32> to vector<16x1xf32>
    %cst_95 = arith.constant 3.200000e+01 : f32
    %131 = vector.broadcast %cst_95 : f32 to vector<16x1xf32>
    %132 = arith.divf %130, %131 : vector<16x1xf32>
    %133 = vector.broadcast %132 : vector<16x1xf32> to vector<16x32xf32>
    %134 = arith.subf %126, %133 : vector<16x32xf32>
    %135 = arith.mulf %134, %134 : vector<16x32xf32>
    %cst_96 = arith.constant dense<0.000000e+00> : vector<16xf32>
    %136 = vector.multi_reduction <add>, %135, %cst_96 [1] : vector<16x32xf32> to vector<16xf32>
    %137 = vector.shape_cast %136 : vector<16xf32> to vector<16x1xf32>
    %cst_97 = arith.constant 0.0322580636 : f32
    %138 = vector.broadcast %cst_97 : f32 to vector<16x1xf32>
    %139 = arith.mulf %137, %138 : vector<16x1xf32>
    %140 = math.sqrt %139 : vector<16x1xf32>
    %cst_98 = arith.constant 9.99999997E-7 : f32
    %141 = vector.broadcast %cst_98 : f32 to vector<16x1xf32>
    %142 = arith.addf %140, %141 : vector<16x1xf32>
    %143 = tpu.reciprocal %142 {approx = true} : vector<16x1xf32> -> vector<16x1xf32>
    %144 = vector.broadcast %132 : vector<16x1xf32> to vector<16x32xf32>
    %145 = arith.subf %126, %144 : vector<16x32xf32>
    %146 = vector.broadcast %127 : vector<1x32xf32> to vector<16x32xf32>
    %147 = arith.mulf %146, %145 : vector<16x32xf32>
    %148 = vector.broadcast %143 : vector<16x1xf32> to vector<16x32xf32>
    %149 = arith.mulf %147, %148 : vector<16x32xf32>
    %150 = vector.broadcast %128 : vector<1x32xf32> to vector<16x32xf32>
    %151 = arith.addf %149, %150 : vector<16x32xf32>
    %cst_99 = arith.constant dense<0.000000e+00> : vector<16x64xf32>
    %152 = tpu.matmul %151, %23, %cst_99 {dimension_numbers = #tpu.dot_dimension_numbers<[1], [0], [0], [1], [0, 0, 1, 1], [], []>} : vector<16x32xf32>, vector<32x64xf32>, vector<16x64xf32> -> vector<16x64xf32>
    %153 = vector.broadcast %25 : vector<1x64xf32> to vector<16x64xf32>
    %154 = arith.addf %152, %153 : vector<16x64xf32>
    %cst_100 = arith.constant 0.000000e+00 : f32
    %155 = vector.broadcast %cst_100 : f32 to vector<16x64xf32>
    %156 = arith.maximumf %154, %155 : vector<16x64xf32>
    %cst_101 = arith.constant dense<0.000000e+00> : vector<16x32xf32>
    %157 = tpu.matmul %156, %27, %cst_101 {dimension_numbers = #tpu.dot_dimension_numbers<[1], [0], [0], [1], [0, 0, 1, 1], [], []>} : vector<16x64xf32>, vector<64x32xf32>, vector<16x32xf32> -> vector<16x32xf32>
    %158 = arith.addf %126, %157 : vector<16x32xf32>
    %159 = vector.broadcast %29 : vector<1x32xf32> to vector<16x32xf32>
    %160 = arith.addf %158, %159 : vector<16x32xf32>
    %c1 = arith.constant 1 : index
    %c0_102 = arith.constant 0 : index
    %c0_103 = arith.constant 0 : index
    %161 = vector.load %arg2[%c1, %c0_102, %c0_103] : memref<2x32x96xf32, #tpu.memory_space<vmem>>, vector<1x32x96xf32>
    %162 = vector.shape_cast %161 : vector<1x32x96xf32> to vector<32x96xf32>
    %c1_104 = arith.constant 1 : index
    %c0_105 = arith.constant 0 : index
    %c0_106 = arith.constant 0 : index
    %163 = vector.load %arg3[%c1_104, %c0_105, %c0_106] : memref<2x1x96xf32, #tpu.memory_space<vmem>>, vector<1x1x96xf32>
    %164 = vector.shape_cast %163 : vector<1x1x96xf32> to vector<1x96xf32>
    %c1_107 = arith.constant 1 : index
    %c0_108 = arith.constant 0 : index
    %c0_109 = arith.constant 0 : index
    %165 = vector.load %arg4[%c1_107, %c0_108, %c0_109] : memref<2x32x32xf32, #tpu.memory_space<vmem>>, vector<1x32x32xf32>
    %166 = vector.shape_cast %165 : vector<1x32x32xf32> to vector<32x32xf32>
    %c1_110 = arith.constant 1 : index
    %c0_111 = arith.constant 0 : index
    %c0_112 = arith.constant 0 : index
    %167 = vector.load %arg5[%c1_110, %c0_111, %c0_112] : memref<2x1x32xf32, #tpu.memory_space<vmem>>, vector<1x1x32xf32>
    %168 = vector.shape_cast %167 : vector<1x1x32xf32> to vector<1x32xf32>
    %c1_113 = arith.constant 1 : index
    %c0_114 = arith.constant 0 : index
    %c0_115 = arith.constant 0 : index
    %169 = vector.load %arg6[%c1_113, %c0_114, %c0_115] : memref<2x4x32xf32, #tpu.memory_space<vmem>>, vector<1x4x32xf32>
    %170 = vector.shape_cast %169 : vector<1x4x32xf32> to vector<4x32xf32>
    %c1_116 = arith.constant 1 : index
    %c0_117 = arith.constant 0 : index
    %c0_118 = arith.constant 0 : index
    %171 = vector.load %arg7[%c1_116, %c0_117, %c0_118] : memref<2x32x64xf32, #tpu.memory_space<vmem>>, vector<1x32x64xf32>
    %172 = vector.shape_cast %171 : vector<1x32x64xf32> to vector<32x64xf32>
    %c1_119 = arith.constant 1 : index
    %c0_120 = arith.constant 0 : index
    %c0_121 = arith.constant 0 : index
    %173 = vector.load %arg8[%c1_119, %c0_120, %c0_121] : memref<2x1x64xf32, #tpu.memory_space<vmem>>, vector<1x1x64xf32>
    %174 = vector.shape_cast %173 : vector<1x1x64xf32> to vector<1x64xf32>
    %c1_122 = arith.constant 1 : index
    %c0_123 = arith.constant 0 : index
    %c0_124 = arith.constant 0 : index
    %175 = vector.load %arg9[%c1_122, %c0_123, %c0_124] : memref<2x64x32xf32, #tpu.memory_space<vmem>>, vector<1x64x32xf32>
    %176 = vector.shape_cast %175 : vector<1x64x32xf32> to vector<64x32xf32>
    %c1_125 = arith.constant 1 : index
    %c0_126 = arith.constant 0 : index
    %c0_127 = arith.constant 0 : index
    %177 = vector.load %arg10[%c1_125, %c0_126, %c0_127] : memref<2x1x32xf32, #tpu.memory_space<vmem>>, vector<1x1x32xf32>
    %178 = vector.shape_cast %177 : vector<1x1x32xf32> to vector<1x32xf32>
    %179 = vector.extract_strided_slice %170 {offsets = [0, 0], sizes = [1, 32], strides = [1, 1]} : vector<4x32xf32> to vector<1x32xf32>
    %180 = vector.extract_strided_slice %170 {offsets = [1, 0], sizes = [1, 32], strides = [1, 1]} : vector<4x32xf32> to vector<1x32xf32>
    %cst_128 = arith.constant dense<0.000000e+00> : vector<16xf32>
    %181 = vector.multi_reduction <add>, %160, %cst_128 [1] : vector<16x32xf32> to vector<16xf32>
    %182 = vector.shape_cast %181 : vector<16xf32> to vector<16x1xf32>
    %cst_129 = arith.constant 3.200000e+01 : f32
    %183 = vector.broadcast %cst_129 : f32 to vector<16x1xf32>
    %184 = arith.divf %182, %183 : vector<16x1xf32>
    %185 = vector.broadcast %184 : vector<16x1xf32> to vector<16x32xf32>
    %186 = arith.subf %160, %185 : vector<16x32xf32>
    %187 = arith.mulf %186, %186 : vector<16x32xf32>
    %cst_130 = arith.constant dense<0.000000e+00> : vector<16xf32>
    %188 = vector.multi_reduction <add>, %187, %cst_130 [1] : vector<16x32xf32> to vector<16xf32>
    %189 = vector.shape_cast %188 : vector<16xf32> to vector<16x1xf32>
    %cst_131 = arith.constant 0.0322580636 : f32
    %190 = vector.broadcast %cst_131 : f32 to vector<16x1xf32>
    %191 = arith.mulf %189, %190 : vector<16x1xf32>
    %192 = math.sqrt %191 : vector<16x1xf32>
    %cst_132 = arith.constant 9.99999997E-7 : f32
    %193 = vector.broadcast %cst_132 : f32 to vector<16x1xf32>
    %194 = arith.addf %192, %193 : vector<16x1xf32>
    %195 = tpu.reciprocal %194 {approx = true} : vector<16x1xf32> -> vector<16x1xf32>
    %196 = vector.broadcast %184 : vector<16x1xf32> to vector<16x32xf32>
    %197 = arith.subf %160, %196 : vector<16x32xf32>
    %198 = vector.broadcast %179 : vector<1x32xf32> to vector<16x32xf32>
    %199 = arith.mulf %198, %197 : vector<16x32xf32>
    %200 = vector.broadcast %195 : vector<16x1xf32> to vector<16x32xf32>
    %201 = arith.mulf %199, %200 : vector<16x32xf32>
    %202 = vector.broadcast %180 : vector<1x32xf32> to vector<16x32xf32>
    %203 = arith.addf %201, %202 : vector<16x32xf32>
    %cst_133 = arith.constant dense<0.000000e+00> : vector<16x96xf32>
    %204 = tpu.matmul %203, %162, %cst_133 {dimension_numbers = #tpu.dot_dimension_numbers<[1], [0], [0], [1], [0, 0, 1, 1], [], []>} : vector<16x32xf32>, vector<32x96xf32>, vector<16x96xf32> -> vector<16x96xf32>
    %205 = vector.broadcast %164 : vector<1x96xf32> to vector<16x96xf32>
    %206 = arith.addf %204, %205 : vector<16x96xf32>
    %207 = vector.extract_strided_slice %206 {offsets = [0, 0], sizes = [16, 8], strides = [1, 1]} : vector<16x96xf32> to vector<16x8xf32>
    %208 = vector.shape_cast %207 : vector<16x8xf32> to vector<2x8x8xf32>
    %c0_134 = arith.constant 0 : index
    %c0_135 = arith.constant 0 : index
    %c0_136 = arith.constant 0 : index
    %209 = vector.load %arg13[%c0_134, %c0_135, %c0_136] : memref<8x8x8xf32, #tpu.memory_space<vmem>>, vector<2x8x8xf32>
    tpu.vector_store %arg13[%c0_134, %c0_135, %c0_136], %208 {strides = array<i32>} : memref<8x8x8xf32, #tpu.memory_space<vmem>>, vector<2x8x8xf32>,
    %210 = vector.extract_strided_slice %206 {offsets = [0, 32], sizes = [16, 8], strides = [1, 1]} : vector<16x96xf32> to vector<16x8xf32>
    %211 = vector.shape_cast %210 : vector<16x8xf32> to vector<2x8x8xf32>
    %c0_137 = arith.constant 0 : index
    %c0_138 = arith.constant 0 : index
    %c0_139 = arith.constant 0 : index
    %212 = vector.load %arg14[%c0_137, %c0_138, %c0_139] : memref<8x8x8xf32, #tpu.memory_space<vmem>>, vector<2x8x8xf32>
    tpu.vector_store %arg14[%c0_137, %c0_138, %c0_139], %211 {strides = array<i32>} : memref<8x8x8xf32, #tpu.memory_space<vmem>>, vector<2x8x8xf32>,
    %213 = vector.extract_strided_slice %206 {offsets = [0, 64], sizes = [16, 8], strides = [1, 1]} : vector<16x96xf32> to vector<16x8xf32>
    %214 = vector.shape_cast %213 : vector<16x8xf32> to vector<2x8x8xf32>
    %c0_140 = arith.constant 0 : index
    %c0_141 = arith.constant 0 : index
    %c0_142 = arith.constant 0 : index
    %215 = vector.load %arg15[%c0_140, %c0_141, %c0_142] : memref<8x8x8xf32, #tpu.memory_space<vmem>>, vector<2x8x8xf32>
    tpu.vector_store %arg15[%c0_140, %c0_141, %c0_142], %214 {strides = array<i32>} : memref<8x8x8xf32, #tpu.memory_space<vmem>>, vector<2x8x8xf32>,
    %216 = vector.extract_strided_slice %206 {offsets = [0, 8], sizes = [16, 8], strides = [1, 1]} : vector<16x96xf32> to vector<16x8xf32>
    %217 = vector.shape_cast %216 : vector<16x8xf32> to vector<2x8x8xf32>
    %c2_143 = arith.constant 2 : index
    %c0_144 = arith.constant 0 : index
    %c0_145 = arith.constant 0 : index
    %218 = vector.load %arg13[%c2_143, %c0_144, %c0_145] : memref<8x8x8xf32, #tpu.memory_space<vmem>>, vector<2x8x8xf32>
    tpu.vector_store %arg13[%c2_143, %c0_144, %c0_145], %217 {strides = array<i32>} : memref<8x8x8xf32, #tpu.memory_space<vmem>>, vector<2x8x8xf32>,
    %219 = vector.extract_strided_slice %206 {offsets = [0, 40], sizes = [16, 8], strides = [1, 1]} : vector<16x96xf32> to vector<16x8xf32>
    %220 = vector.shape_cast %219 : vector<16x8xf32> to vector<2x8x8xf32>
    %c2_146 = arith.constant 2 : index
    %c0_147 = arith.constant 0 : index
    %c0_148 = arith.constant 0 : index
    %221 = vector.load %arg14[%c2_146, %c0_147, %c0_148] : memref<8x8x8xf32, #tpu.memory_space<vmem>>, vector<2x8x8xf32>
    tpu.vector_store %arg14[%c2_146, %c0_147, %c0_148], %220 {strides = array<i32>} : memref<8x8x8xf32, #tpu.memory_space<vmem>>, vector<2x8x8xf32>,
    %222 = vector.extract_strided_slice %206 {offsets = [0, 72], sizes = [16, 8], strides = [1, 1]} : vector<16x96xf32> to vector<16x8xf32>
    %223 = vector.shape_cast %222 : vector<16x8xf32> to vector<2x8x8xf32>
    %c2_149 = arith.constant 2 : index
    %c0_150 = arith.constant 0 : index
    %c0_151 = arith.constant 0 : index
    %224 = vector.load %arg15[%c2_149, %c0_150, %c0_151] : memref<8x8x8xf32, #tpu.memory_space<vmem>>, vector<2x8x8xf32>
    tpu.vector_store %arg15[%c2_149, %c0_150, %c0_151], %223 {strides = array<i32>} : memref<8x8x8xf32, #tpu.memory_space<vmem>>, vector<2x8x8xf32>,
    %225 = vector.extract_strided_slice %206 {offsets = [0, 16], sizes = [16, 8], strides = [1, 1]} : vector<16x96xf32> to vector<16x8xf32>
    %226 = vector.shape_cast %225 : vector<16x8xf32> to vector<2x8x8xf32>
    %c4_152 = arith.constant 4 : index
    %c0_153 = arith.constant 0 : index
    %c0_154 = arith.constant 0 : index
    %227 = vector.load %arg13[%c4_152, %c0_153, %c0_154] : memref<8x8x8xf32, #tpu.memory_space<vmem>>, vector<2x8x8xf32>
    tpu.vector_store %arg13[%c4_152, %c0_153, %c0_154], %226 {strides = array<i32>} : memref<8x8x8xf32, #tpu.memory_space<vmem>>, vector<2x8x8xf32>,
    %228 = vector.extract_strided_slice %206 {offsets = [0, 48], sizes = [16, 8], strides = [1, 1]} : vector<16x96xf32> to vector<16x8xf32>
    %229 = vector.shape_cast %228 : vector<16x8xf32> to vector<2x8x8xf32>
    %c4_155 = arith.constant 4 : index
    %c0_156 = arith.constant 0 : index
    %c0_157 = arith.constant 0 : index
    %230 = vector.load %arg14[%c4_155, %c0_156, %c0_157] : memref<8x8x8xf32, #tpu.memory_space<vmem>>, vector<2x8x8xf32>
    tpu.vector_store %arg14[%c4_155, %c0_156, %c0_157], %229 {strides = array<i32>} : memref<8x8x8xf32, #tpu.memory_space<vmem>>, vector<2x8x8xf32>,
    %231 = vector.extract_strided_slice %206 {offsets = [0, 80], sizes = [16, 8], strides = [1, 1]} : vector<16x96xf32> to vector<16x8xf32>
    %232 = vector.shape_cast %231 : vector<16x8xf32> to vector<2x8x8xf32>
    %c4_158 = arith.constant 4 : index
    %c0_159 = arith.constant 0 : index
    %c0_160 = arith.constant 0 : index
    %233 = vector.load %arg15[%c4_158, %c0_159, %c0_160] : memref<8x8x8xf32, #tpu.memory_space<vmem>>, vector<2x8x8xf32>
    tpu.vector_store %arg15[%c4_158, %c0_159, %c0_160], %232 {strides = array<i32>} : memref<8x8x8xf32, #tpu.memory_space<vmem>>, vector<2x8x8xf32>,
    %234 = vector.extract_strided_slice %206 {offsets = [0, 24], sizes = [16, 8], strides = [1, 1]} : vector<16x96xf32> to vector<16x8xf32>
    %235 = vector.shape_cast %234 : vector<16x8xf32> to vector<2x8x8xf32>
    %c6_161 = arith.constant 6 : index
    %c0_162 = arith.constant 0 : index
    %c0_163 = arith.constant 0 : index
    %236 = vector.load %arg13[%c6_161, %c0_162, %c0_163] : memref<8x8x8xf32, #tpu.memory_space<vmem>>, vector<2x8x8xf32>
    tpu.vector_store %arg13[%c6_161, %c0_162, %c0_163], %235 {strides = array<i32>} : memref<8x8x8xf32, #tpu.memory_space<vmem>>, vector<2x8x8xf32>,
    %237 = vector.extract_strided_slice %206 {offsets = [0, 56], sizes = [16, 8], strides = [1, 1]} : vector<16x96xf32> to vector<16x8xf32>
    %238 = vector.shape_cast %237 : vector<16x8xf32> to vector<2x8x8xf32>
    %c6_164 = arith.constant 6 : index
    %c0_165 = arith.constant 0 : index
    %c0_166 = arith.constant 0 : index
    %239 = vector.load %arg14[%c6_164, %c0_165, %c0_166] : memref<8x8x8xf32, #tpu.memory_space<vmem>>, vector<2x8x8xf32>
    tpu.vector_store %arg14[%c6_164, %c0_165, %c0_166], %238 {strides = array<i32>} : memref<8x8x8xf32, #tpu.memory_space<vmem>>, vector<2x8x8xf32>,
    %240 = vector.extract_strided_slice %206 {offsets = [0, 88], sizes = [16, 8], strides = [1, 1]} : vector<16x96xf32> to vector<16x8xf32>
    %241 = vector.shape_cast %240 : vector<16x8xf32> to vector<2x8x8xf32>
    %c6_167 = arith.constant 6 : index
    %c0_168 = arith.constant 0 : index
    %c0_169 = arith.constant 0 : index
    %242 = vector.load %arg15[%c6_167, %c0_168, %c0_169] : memref<8x8x8xf32, #tpu.memory_space<vmem>>, vector<2x8x8xf32>
    tpu.vector_store %arg15[%c6_167, %c0_168, %c0_169], %241 {strides = array<i32>} : memref<8x8x8xf32, #tpu.memory_space<vmem>>, vector<2x8x8xf32>,
    %c0_170 = arith.constant 0 : index
    %c0_171 = arith.constant 0 : index
    %c0_172 = arith.constant 0 : index
    %243 = vector.load %arg13[%c0_170, %c0_171, %c0_172] : memref<8x8x8xf32, #tpu.memory_space<vmem>>, vector<8x8x8xf32>
    %c0_173 = arith.constant 0 : index
    %c0_174 = arith.constant 0 : index
    %c0_175 = arith.constant 0 : index
    %244 = vector.load %arg14[%c0_173, %c0_174, %c0_175] : memref<8x8x8xf32, #tpu.memory_space<vmem>>, vector<8x8x8xf32>
    "tpu.trace_start"() <{level = 10 : i32, message = "bqp,bkp->bqk"}> : () -> ()
    %cst_176 = arith.constant dense<0.000000e+00> : vector<8x8x8xf32>
    %245 = tpu.matmul %243, %244, %cst_176 {dimension_numbers = #tpu.dot_dimension_numbers<[2], [2], [1], [1], [0, 0, 0, 1, 1, 1], [0], [0]>} : vector<8x8x8xf32>, vector<8x8x8xf32>, vector<8x8x8xf32> -> vector<8x8x8xf32>
    "tpu.trace_stop"() : () -> ()
    %246 = arith.addf %245, %11 : vector<8x8x8xf32>
    %cst_177 = arith.constant dense<0xFF800000> : vector<8x8xf32>
    %247 = vector.multi_reduction <maximumf>, %246, %cst_177 [2] : vector<8x8x8xf32> to vector<8x8xf32>
    %248 = vector.shape_cast %247 : vector<8x8xf32> to vector<8x8x1xf32>
    %249 = vector.broadcast %248 : vector<8x8x1xf32> to vector<8x8x8xf32>
    %250 = arith.subf %246, %249 : vector<8x8x8xf32>
    %251 = math.exp %250 : vector<8x8x8xf32>
    %cst_178 = arith.constant dense<0.000000e+00> : vector<8x8xf32>
    %252 = vector.multi_reduction <add>, %251, %cst_178 [2] : vector<8x8x8xf32> to vector<8x8xf32>
    %253 = vector.shape_cast %252 : vector<8x8xf32> to vector<8x8x1xf32>
    %254 = tpu.reciprocal %253 {approx = true} : vector<8x8x1xf32> -> vector<8x8x1xf32>
    %255 = vector.broadcast %254 : vector<8x8x1xf32> to vector<8x8x8xf32>
    %256 = arith.mulf %251, %255 : vector<8x8x8xf32>
    %c0_179 = arith.constant 0 : index
    %c0_180 = arith.constant 0 : index
    %c0_181 = arith.constant 0 : index
    %257 = vector.load %arg15[%c0_179, %c0_180, %c0_181] : memref<8x8x8xf32, #tpu.memory_space<vmem>>, vector<8x8x8xf32>
    "tpu.trace_start"() <{level = 10 : i32, message = "bqk,bkp->bqp"}> : () -> ()
    %cst_182 = arith.constant dense<0.000000e+00> : vector<8x8x8xf32>
    %258 = tpu.matmul %256, %257, %cst_182 {dimension_numbers = #tpu.dot_dimension_numbers<[2], [1], [1], [2], [0, 0, 0, 1, 1, 2], [0], [0]>} : vector<8x8x8xf32>, vector<8x8x8xf32>, vector<8x8x8xf32> -> vector<8x8x8xf32>
    "tpu.trace_stop"() : () -> ()
    %259 = vector.extract_strided_slice %258 {offsets = [0, 0, 0], sizes = [2, 8, 8], strides = [1, 1, 1]} : vector<8x8x8xf32> to vector<2x8x8xf32>
    %260 = vector.shape_cast %259 : vector<2x8x8xf32> to vector<16x8xf32>
    %c0_183 = arith.constant 0 : index
    %c0_184 = arith.constant 0 : index
    %261 = vector.load %arg16[%c0_183, %c0_184] : memref<16x32xf32, #tpu.memory_space<vmem>>, vector<16x8xf32>
    tpu.vector_store %arg16[%c0_183, %c0_184], %260 {strides = array<i32>} : memref<16x32xf32, #tpu.memory_space<vmem>>, vector<16x8xf32>,
    %262 = vector.extract_strided_slice %258 {offsets = [2, 0, 0], sizes = [2, 8, 8], strides = [1, 1, 1]} : vector<8x8x8xf32> to vector<2x8x8xf32>
    %263 = vector.shape_cast %262 : vector<2x8x8xf32> to vector<16x8xf32>
    %c0_185 = arith.constant 0 : index
    %c8_186 = arith.constant 8 : index
    %264 = vector.load %arg16[%c0_185, %c8_186] : memref<16x32xf32, #tpu.memory_space<vmem>>, vector<16x8xf32>
    tpu.vector_store %arg16[%c0_185, %c8_186], %263 {strides = array<i32>} : memref<16x32xf32, #tpu.memory_space<vmem>>, vector<16x8xf32>,
    %265 = vector.extract_strided_slice %258 {offsets = [4, 0, 0], sizes = [2, 8, 8], strides = [1, 1, 1]} : vector<8x8x8xf32> to vector<2x8x8xf32>
    %266 = vector.shape_cast %265 : vector<2x8x8xf32> to vector<16x8xf32>
    %c0_187 = arith.constant 0 : index
    %c16_188 = arith.constant 16 : index
    %267 = vector.load %arg16[%c0_187, %c16_188] : memref<16x32xf32, #tpu.memory_space<vmem>>, vector<16x8xf32>
    tpu.vector_store %arg16[%c0_187, %c16_188], %266 {strides = array<i32>} : memref<16x32xf32, #tpu.memory_space<vmem>>, vector<16x8xf32>,
    %268 = vector.extract_strided_slice %258 {offsets = [6, 0, 0], sizes = [2, 8, 8], strides = [1, 1, 1]} : vector<8x8x8xf32> to vector<2x8x8xf32>
    %269 = vector.shape_cast %268 : vector<2x8x8xf32> to vector<16x8xf32>
    %c0_189 = arith.constant 0 : index
    %c24_190 = arith.constant 24 : index
    %270 = vector.load %arg16[%c0_189, %c24_190] : memref<16x32xf32, #tpu.memory_space<vmem>>, vector<16x8xf32>
    tpu.vector_store %arg16[%c0_189, %c24_190], %269 {strides = array<i32>} : memref<16x32xf32, #tpu.memory_space<vmem>>, vector<16x8xf32>,
    %c0_191 = arith.constant 0 : index
    %c0_192 = arith.constant 0 : index
    %271 = vector.load %arg16[%c0_191, %c0_192] : memref<16x32xf32, #tpu.memory_space<vmem>>, vector<16x32xf32>
    %cst_193 = arith.constant dense<0.000000e+00> : vector<16x32xf32>
    %272 = tpu.matmul %271, %166, %cst_193 {dimension_numbers = #tpu.dot_dimension_numbers<[1], [0], [0], [1], [0, 0, 1, 1], [], []>} : vector<16x32xf32>, vector<32x32xf32>, vector<16x32xf32> -> vector<16x32xf32>
    %273 = arith.addf %160, %272 : vector<16x32xf32>
    %274 = vector.broadcast %168 : vector<1x32xf32> to vector<16x32xf32>
    %275 = arith.addf %273, %274 : vector<16x32xf32>
    %276 = vector.extract_strided_slice %170 {offsets = [2, 0], sizes = [1, 32], strides = [1, 1]} : vector<4x32xf32> to vector<1x32xf32>
    %277 = vector.extract_strided_slice %170 {offsets = [3, 0], sizes = [1, 32], strides = [1, 1]} : vector<4x32xf32> to vector<1x32xf32>
    %cst_194 = arith.constant dense<0.000000e+00> : vector<16xf32>
    %278 = vector.multi_reduction <add>, %275, %cst_194 [1] : vector<16x32xf32> to vector<16xf32>
    %279 = vector.shape_cast %278 : vector<16xf32> to vector<16x1xf32>
    %cst_195 = arith.constant 3.200000e+01 : f32
    %280 = vector.broadcast %cst_195 : f32 to vector<16x1xf32>
    %281 = arith.divf %279, %280 : vector<16x1xf32>
    %282 = vector.broadcast %281 : vector<16x1xf32> to vector<16x32xf32>
    %283 = arith.subf %275, %282 : vector<16x32xf32>
    %284 = arith.mulf %283, %283 : vector<16x32xf32>
    %cst_196 = arith.constant dense<0.000000e+00> : vector<16xf32>
    %285 = vector.multi_reduction <add>, %284, %cst_196 [1] : vector<16x32xf32> to vector<16xf32>
    %286 = vector.shape_cast %285 : vector<16xf32> to vector<16x1xf32>
    %cst_197 = arith.constant 0.0322580636 : f32
    %287 = vector.broadcast %cst_197 : f32 to vector<16x1xf32>
    %288 = arith.mulf %286, %287 : vector<16x1xf32>
    %289 = math.sqrt %288 : vector<16x1xf32>
    %cst_198 = arith.constant 9.99999997E-7 : f32
    %290 = vector.broadcast %cst_198 : f32 to vector<16x1xf32>
    %291 = arith.addf %289, %290 : vector<16x1xf32>
    %292 = tpu.reciprocal %291 {approx = true} : vector<16x1xf32> -> vector<16x1xf32>
    %293 = vector.broadcast %281 : vector<16x1xf32> to vector<16x32xf32>
    %294 = arith.subf %275, %293 : vector<16x32xf32>
    %295 = vector.broadcast %276 : vector<1x32xf32> to vector<16x32xf32>
    %296 = arith.mulf %295, %294 : vector<16x32xf32>
    %297 = vector.broadcast %292 : vector<16x1xf32> to vector<16x32xf32>
    %298 = arith.mulf %296, %297 : vector<16x32xf32>
    %299 = vector.broadcast %277 : vector<1x32xf32> to vector<16x32xf32>
    %300 = arith.addf %298, %299 : vector<16x32xf32>
    %cst_199 = arith.constant dense<0.000000e+00> : vector<16x64xf32>
    %301 = tpu.matmul %300, %172, %cst_199 {dimension_numbers = #tpu.dot_dimension_numbers<[1], [0], [0], [1], [0, 0, 1, 1], [], []>} : vector<16x32xf32>, vector<32x64xf32>, vector<16x64xf32> -> vector<16x64xf32>
    %302 = vector.broadcast %174 : vector<1x64xf32> to vector<16x64xf32>
    %303 = arith.addf %301, %302 : vector<16x64xf32>
    %cst_200 = arith.constant 0.000000e+00 : f32
    %304 = vector.broadcast %cst_200 : f32 to vector<16x64xf32>
    %305 = arith.maximumf %303, %304 : vector<16x64xf32>
    %cst_201 = arith.constant dense<0.000000e+00> : vector<16x32xf32>
    %306 = tpu.matmul %305, %176, %cst_201 {dimension_numbers = #tpu.dot_dimension_numbers<[1], [0], [0], [1], [0, 0, 1, 1], [], []>} : vector<16x64xf32>, vector<64x32xf32>, vector<16x32xf32> -> vector<16x32xf32>
    %307 = arith.addf %275, %306 : vector<16x32xf32>
    %308 = vector.broadcast %178 : vector<1x32xf32> to vector<16x32xf32>
    %309 = arith.addf %307, %308 : vector<16x32xf32>
    %c0_202 = arith.constant 0 : index
    %c0_203 = arith.constant 0 : index
    %310 = vector.load %arg11[%c0_202, %c0_203] : memref<2x32xf32, #tpu.memory_space<vmem>>, vector<2x32xf32>
    %311 = vector.extract_strided_slice %310 {offsets = [0, 0], sizes = [1, 32], strides = [1, 1]} : vector<2x32xf32> to vector<1x32xf32>
    %312 = vector.extract_strided_slice %310 {offsets = [1, 0], sizes = [1, 32], strides = [1, 1]} : vector<2x32xf32> to vector<1x32xf32>
    %cst_204 = arith.constant dense<0.000000e+00> : vector<16xf32>
    %313 = vector.multi_reduction <add>, %309, %cst_204 [1] : vector<16x32xf32> to vector<16xf32>
    %314 = vector.shape_cast %313 : vector<16xf32> to vector<16x1xf32>
    %cst_205 = arith.constant 3.200000e+01 : f32
    %315 = vector.broadcast %cst_205 : f32 to vector<16x1xf32>
    %316 = arith.divf %314, %315 : vector<16x1xf32>
    %317 = vector.broadcast %316 : vector<16x1xf32> to vector<16x32xf32>
    %318 = arith.subf %309, %317 : vector<16x32xf32>
    %319 = arith.mulf %318, %318 : vector<16x32xf32>
    %cst_206 = arith.constant dense<0.000000e+00> : vector<16xf32>
    %320 = vector.multi_reduction <add>, %319, %cst_206 [1] : vector<16x32xf32> to vector<16xf32>
    %321 = vector.shape_cast %320 : vector<16xf32> to vector<16x1xf32>
    %cst_207 = arith.constant 0.0322580636 : f32
    %322 = vector.broadcast %cst_207 : f32 to vector<16x1xf32>
    %323 = arith.mulf %321, %322 : vector<16x1xf32>
    %324 = math.sqrt %323 : vector<16x1xf32>
    %cst_208 = arith.constant 9.99999997E-7 : f32
    %325 = vector.broadcast %cst_208 : f32 to vector<16x1xf32>
    %326 = arith.addf %324, %325 : vector<16x1xf32>
    %327 = tpu.reciprocal %326 : vector<16x1xf32> -> vector<16x1xf32>
    %328 = vector.broadcast %316 : vector<16x1xf32> to vector<16x32xf32>
    %329 = arith.subf %309, %328 : vector<16x32xf32>
    %330 = vector.broadcast %311 : vector<1x32xf32> to vector<16x32xf32>
    %331 = arith.mulf %330, %329 : vector<16x32xf32>
    %332 = vector.broadcast %327 : vector<16x1xf32> to vector<16x32xf32>
    %333 = arith.mulf %331, %332 : vector<16x32xf32>
    %334 = vector.broadcast %312 : vector<1x32xf32> to vector<16x32xf32>
    %335 = arith.addf %333, %334 : vector<16x32xf32>
    %336 = vector.shape_cast %335 : vector<16x32xf32> to vector<2x8x32xf32>
    %c0_209 = arith.constant 0 : index
    %c0_210 = arith.constant 0 : index
    %c0_211 = arith.constant 0 : index
    %337 = vector.load %arg12[%c0_209, %c0_210, %c0_211] : memref<2x8x32xf32, #tpu.memory_space<vmem>>, vector<2x8x32xf32>
    tpu.vector_store %arg12[%c0_209, %c0_210, %c0_211], %336 {strides = array<i32>} : memref<2x8x32xf32, #tpu.memory_space<vmem>>, vector<2x8x32xf32>,
    return
  }
}

</mosaic_0001>

<bundles_post_ra>
// kernel: tpu_custom_call.1
= control target key start
LH: loop header
LB: loop body
LE: loop exit
PB: predicated region body
PF: predicated region fallthrough
CT: control target
= control target key end

     0   :  { %17 = vsyncpa [#allocation7], 0  ;;  %s3089_s0 = inlined_call_operand.hbm [shape: f32[2,8,32], index: 0, kind: input, shape index: {}]   ;;  %s3090_s1 = inlined_call_operand.hbm [shape: f32[2,1,8], index: 1, kind: input, shape index: {}]   ;;  %s3091_s2 = inlined_call_operand.vmem [shape: f32[2,32,96], index: 2, kind: input, shape index: {}]   ;;  %s3092_s3 = inlined_call_operand.vmem [shape: f32[2,1,96], index: 3, kind: input, shape index: {}]   ;;  %s3093_s4 = inlined_call_operand.vmem [shape: f32[2,32,32], index: 4, kind: input, shape index: {}]   ;;  %s3094_s5 = inlined_call_operand.hbm [shape: f32[2,1,32], index: 5, kind: input, shape index: {}]   ;;  %s3095_s6 = inlined_call_operand.hbm [shape: f32[2,4,32], index: 6, kind: input, shape index: {}]   ;;  %s3096_s7 = inlined_call_operand.vmem [shape: f32[2,32,64], index: 7, kind: input, shape index: {}]   ;;  %s3097_s8 = inlined_call_operand.vmem [shape: f32[2,1,64], index: 8, kind: input, shape index: {}]   ;;  %s3098_s9 = inlined_call_operand.vmem [shape: f32[2,64,32], index: 9, kind: input, shape index: {}]   ;;  %s3099_s10 = inlined_call_operand.vmem [shape: f32[2,1,32], index: 10, kind: input, shape index: {}]   ;;  %s3100_s11 = inlined_call_operand.vmem [shape: f32[2,32], index: 11, kind: input, shape index: {}]   ;;  %s3101_s12 = inlined_call_operand.hbm [shape: f32[2,8,32], index: 12, kind: output, shape index: {}]  }
   0x1   :  { %18 = vsyncpa [#allocation10], 0 }
   0x2   :  { %19 = vsyncpa [#allocation13], 0  ;;  %s38_s23 = sshll.u32 %s3090_s1, 4  ;;  %s39_s23 = int_to_ptr.hbm [resolvable:$true] %s38_s23 }
   0x3   :  { %20 = vsyncpa [#allocation8], 0  ;;  %s2419_s24 = smov [#allocation9]   ;;  %s25_s28 = sshll.u32 %s3089_s0, 4  ;;  %s26_s28 = int_to_ptr.hbm [resolvable:$true] %s25_s28 }
   0x4   :  { %s40_s25 = sshll.u32 %s2419_s24, 4  ;;  %s2420_s29 = smov 16   ;;  %s41_s25 = int_to_ptr.vmem [resolvable:$true] %s40_s25 }
   0x5   :  { %s2421_s30 = smov 1   ;;  %s2422_s13 = smov [#allocation6]  }
   0x6   :  { %46 = dma.hbm_to_vmem [thread:$0]  %s39_s23, 32, %s41_s25, [#allocation10], %s2420_s29, %s2420_s29, %s2421_s30  }
   0x7   :  { %s27_s14 = sshll.u32 %s2422_s13, 4  ;;  %s3102_s15 = smov 128   ;;  %s28_s14 = int_to_ptr.vmem [resolvable:$true] %s27_s14 }
   0x8   :  { %s2424_s1 = smov 8   ;;  %s57_s18 = sshll.u32 %s3094_s5, 4  ;;  %s58_s18 = int_to_ptr.hbm [resolvable:$true] %s57_s18 }
   0x9   :  { %33 = dma.hbm_to_vmem [thread:$0]  %s26_s28, 256, %s28_s14, [#allocation7], %s3102_s15, %s3102_s15, %s2424_s1  }
   0xa   :  { %s2425_s0 = smov [#allocation11]   ;;  %s70_s22 = sshll.u32 %s3095_s6, 4  ;;  %s71_s22 = int_to_ptr.hbm [resolvable:$true] %s70_s22 }
   0xb   :  { %s59_s19 = sshll.u32 %s2425_s0, 4  ;;  %s2426_s23 = smov [#allocation12]   ;;  %s60_s19 = int_to_ptr.vmem [resolvable:$true] %s59_s19 }
   0xc   :  { %65 = dma.hbm_to_vmem [thread:$0]  %s58_s18, 32, %s60_s19, [#allocation10], %s2420_s29, %s2420_s29, %s2421_s30  }
   0xd   :  { %s72_s24 = sshll.u32 %s2426_s23, 4  ;;  %s2427_s25 = smov 64   ;;  %s73_s24 = int_to_ptr.vmem [resolvable:$true] %s72_s24 }
   0xe   :  { %s2428_s26 = smov 4  }
   0xf   :  { %78 = dma.hbm_to_vmem [thread:$0]  %s71_s22, 128, %s73_s24, [#allocation13], %s2427_s25, %s2427_s25, %s2428_s26  }
  0x10   :  { %2411 = dma.done.wait [#allocation7], 256  }
  0x11   :  { %2412 = vsyncadd [#allocation7], 4294967040 }
  0x12   :  { %2413 = dma.done.wait [#allocation10], 64  }
  0x13   :  { %2414 = vsyncadd [#allocation10], 4294967232 }
  0x14   :  { %2415 = dma.done.wait [#allocation13], 128  }
  0x15   :  { %2416 = vsyncadd [#allocation13], 4294967168  ;;  %vm144_vm0 = vcmask 261120   ;;  %v2529_v0 = vld [vmem:[#allocation6] sm:$0xff]  ;;  %v2533_v2 = vld [vmem:[#allocation6 + $0x8] sm:$0xff]  ;;  %v2429_v4 = vmov 32.0  }
  0x16   :  { %v145_v1 = vsel %vm144_vm0, %v2529_v0, 0.0  ;;  %v148_v3 = vsel %vm144_vm0, %v2533_v2, 0.0  ;;  %2185 = vrcp.f32 %v2429_v4  ;;  %v122_v21 = vld [vmem:[%s3091_s2 + $0x18] sm:$0xff]  ;;  %v121_v22 = vld [vmem:[%s3091_s2 + $0x10] sm:$0xff]  ;;  %v120_v23 = vld [vmem:[%s3091_s2 + $0x8] sm:$0xff]  ;;  %vm240_vm6 = vcmask 64512  }
  0x17   :  { %146 = vadd.xlane.f32.xlu0 %v145_v1  ;;  %229 = vmatpush.msra.mxu0 %v122_v21  ;;  %v119_v24 = vld [vmem:[%s3091_s2] sm:$0xff]  ;;  %s2430_s0 = smov 88   ;;  %s2431_s19 = smov 96   ;;  %vm856_vm9 = vcmask 130112   ;;  %vm867_vm10 = vcmask 195712   ;;  %vm878_vm11 = vcmask 261312  }
  0x18   :  { %v2557_v43 = vld [vmem:[#allocation12] sm:$0xf]  ;;  %v2177_v62 = vld [vmem:[%s3092_s3] ss:$0 sm:$0xff]  ;;  %s2432_s20 = smov 80   ;;  %s2433_s21 = smov 120  }
  0x19   :  { %230 = vmatpush.msra.mxu0 %v121_v22  ;;  %v200_v47 = vperm.slane %v2557_v43, 0  ;;  %v205_v52 = vperm.slane %v2557_v43, 1  ;;  %s2434_s22 = smov 104   ;;  %s2435_s23 = smov 112  }
  0x1a   :  { %s2436_s24 = smov 72   ;;  %s2437_s26 = smov 48  }
  0x1b   :  { %231 = vmatpush.msra.mxu0 %v120_v23  ;;  %s2438_s5 = smov 56   ;;  %s2440_s6 = smov 40  }
  0x1c   :  { %v2186_v5 = vpop.eup %2185  ;;  %s3103_s27 = smov 24   ;;  %s2051_s28 = sshll.u32 %s3101_s12, 4  ;;  %s2052_s28 = int_to_ptr.hbm [resolvable:$true] %s2051_s28 }
  0x1d   :  { %v152_v6 = vmul.f32 32.0, %v2186_v5  ;;  %vm156_vm1 = vweird.f32 %v2186_v5  ;;  %232 = vmatpush.msra.mxu0 %v119_v24  ;;  %s3106_s30 = smov 128  }
  0x1f   :  { %149 = vadd.xlane.f32.xlu0 %v148_v3  ;;  %v153_v7 = vsub.f32 1.0, %v152_v6 }
  0x21   :  { %v154_v8 = vmul.f32 %v2186_v5, %v153_v7 }
  0x23   :  { %v155_v9 = vadd.f32 %v2186_v5, %v154_v8 }
  0x25   :  { %v2537_v10 = vsel %vm156_vm1, %v2186_v5, %v155_v9  ;;  %vm1009_vm1 = vcmask 523264  }
  0x8a   :  { %v147_v11 = vpop.xlane.xlu0 %146 }
  0x8b   :  { %v158_v12 = vmul.f32 %v2537_v10, %v147_v11 }
  0x8d   :  { %v160_v13 = vsub.f32 %v2529_v0, %v158_v12 }
  0x8f   :  { %v162_v14 = vmul.f32 %v160_v13, %v160_v13  ;;  %v201_v51 = vmul.f32 %v200_v47, %v160_v13 }
  0x91   :  { %v164_v15 = vsel %vm144_vm0, %v162_v14, 0.0 }
  0x92   :  { %165 = vadd.xlane.f32.xlu1 %v164_v15  ;;  %v150_v16 = vpop.xlane.xlu0 %149 }
  0x93   :  { %v159_v17 = vmul.f32 %v2537_v10, %v150_v16 }
  0x95   :  { %v161_v18 = vsub.f32 %v2533_v2, %v159_v17 }
  0x97   :  { %v163_v19 = vmul.f32 %v161_v18, %v161_v18  ;;  %v202_v58 = vmul.f32 %v200_v47, %v161_v18  ;;  %v107_v47 = vld [vmem:[#allocation9] sm:$0x1] }
  0x98   :  { %vm109_vm7 = vcmp.eq.f32.partialorder %v107_v47, 0.0 }
  0x99   :  { %v167_v20 = vsel %vm144_vm0, %v163_v19, 0.0 }
  0x9a   :  { %168 = vadd.xlane.f32.xlu1 %v167_v20 }
 0x105   :  { %v166_v25 = vpop.xlane.xlu1 %165 }
 0x106   :  { %v170_v26 = vmul.f32 0.032258064, %v166_v25 }
 0x108   :  { %2187 = vrsqrt.f32 %v170_v26  ;;  %vm179_vm2 = vcmp.eq.f32.partialorder %v170_v26, inf  ;;  %v182_v39 = vand.u32 2147483648, %v170_v26  ;;  %vm181_vm3 = vcmp.eq.f32.partialorder %v170_v26, 0.0 }
 0x10d   :  { %v169_v27 = vpop.xlane.xlu1 %168 }
 0x10e   :  { %v2188_v28 = vpop.eup %2187  ;;  %v171_v29 = vmul.f32 0.032258064, %v169_v27 }
 0x10f   :  { %v173_v30 = vmul.f32 %v2188_v28, %v170_v26 }
 0x110   :  { %2189 = vrsqrt.f32 %v171_v29  ;;  %vm191_vm4 = vcmp.eq.f32.partialorder %v171_v29, inf  ;;  %v194_v49 = vand.u32 2147483648, %v171_v29  ;;  %vm193_vm5 = vcmp.eq.f32.partialorder %v171_v29, 0.0 }
 0x111   :  { %v174_v31 = vmul.f32 %v2188_v28, %v173_v30 }
 0x113   :  { %v175_v32 = vmul.f32 0.5, %v174_v31 }
 0x115   :  { %v176_v33 = vsub.f32 1.5, %v175_v32 }
 0x116   :  { %v2190_v34 = vpop.eup %2189 }
 0x117   :  { %v185_v35 = vmul.f32 %v2190_v34, %v171_v29  ;;  %v177_v36 = vmul.f32 %v2188_v28, %v176_v33 }
 0x119   :  { %v178_v37 = vmul.f32 %v177_v36, %v170_v26  ;;  %v186_v38 = vmul.f32 %v2190_v34, %v185_v35 }
 0x11b   :  { %v180_v40 = vsel %vm179_vm2, %v170_v26, %v178_v37  ;;  %v187_v41 = vmul.f32 0.5, %v186_v38 }
 0x11c   :  { %v183_v42 = vsel %vm181_vm3, %v182_v39, %v180_v40 }
 0x11d   :  { %v196_v44 = vadd.f32 1e-06, %v183_v42  ;;  %v188_v45 = vsub.f32 1.5, %v187_v41 }
 0x11f   :  { %2191 = vrcp.f32 %v196_v44  ;;  %v189_v46 = vmul.f32 %v2190_v34, %v188_v45 }
 0x121   :  { %v190_v48 = vmul.f32 %v189_v46, %v171_v29 }
 0x123   :  { %v192_v50 = vsel %vm191_vm4, %v171_v29, %v190_v48  ;;  %v2439_v48 = vmov 0.0  }
 0x124   :  { %v195_v53 = vsel %vm193_vm5, %v194_v49, %v192_v50  ;;  %v111_v49 = vsel %vm109_vm7, -1e+09, %v2439_v48 }
 0x125   :  { %v2192_v54 = vpop.eup %2191  ;;  %v197_v55 = vadd.f32 1e-06, %v195_v53  ;;  %v2647_v50 = vperm.slane %v111_v49, 0 }
 0x126   :  { %v203_v56 = vmul.f32 %v2192_v54, %v201_v51  ;;  %v108_v54 = vld [vmem:[#allocation9 + $0x1] sm:$0x1] }
 0x127   :  { %2193 = vrcp.f32 %v197_v55  ;;  %vm110_vm8 = vcmp.eq.f32.partialorder %v108_v54, 0.0 }
 0x128   :  { %v206_v57 = vadd.f32 %v205_v52, %v203_v56  ;;  %v112_v55 = vsel %vm110_vm8, -1e+09, %v2439_v48 }
 0x129   :  { %v2651_v56 = vperm.slane %v112_v55, 0 }
 0x12a   :  { %2066 = vmatmul.msk.f32.vlgmr.msra.gmra.mxu0 %vm144_vm0, %v206_v57 }
 0x12d   :  { %v2194_v59 = vpop.eup %2193 }
 0x12e   :  { %v204_v60 = vmul.f32 %v2194_v59, %v202_v58 }
 0x130   :  { %v207_v61 = vadd.f32 %v205_v52, %v204_v60 }
 0x132   :  { %2067 = vmatmul.msk.f32.gmra.mxu0 %vm144_vm0, %v207_v61 }
 0x1a7   :  { %v234_v63 = vpop.f32.mrf.mxu0 }
 0x1a8   :  { %v2566_v1 = vadd.f32 %v2177_v62, %v234_v63 }
 0x1aa   :  { %270 = vrot.lane.b32.xlu0 %v2566_v1, %s2430_s0  ;;  %245 = vrot.lane.b32.xlu2 %v2566_v1, %s2431_s19  ;;  %241 = vst.msk [vmem:[#allocation2] sm:$0xff] %vm240_vm6, %v2566_v1 }
 0x1ab   :  { %297 = vrot.lane.b32.xlu1 %v2566_v1, %s2432_s20 }
 0x1af   :  { %v237_v3 = vpop.f32.mrf.mxu0 }
 0x1b0   :  { %v2576_v4 = vadd.f32 %v2177_v62, %v237_v3 }
 0x1b1   :  { %v342_v8 = vld [vmem:[#allocation2] sm:$0xff] }
 0x1b2   :  { %261 = vrot.lane.b32.xlu2 %v2566_v1, %s2433_s21  ;;  %263 = vrot.lane.b32.xlu0 %v2576_v4, %s2433_s21  ;;  %242 = vst.msk [vmem:[#allocation2 + $0x8] sm:$0xff] %vm240_vm6, %v2576_v4 }
 0x1b3   :  { %317 = vrot.lane.b32.xlu1 %v2576_v4, %s2434_s22 }
 0x1b9   :  { %v343_v20 = vld [vmem:[#allocation2 + $0x8] sm:$0xff] }
 0x1ba   :  { %288 = vrot.lane.b32.xlu2 %v2566_v1, %s2435_s23  ;;  %324 = vrot.lane.b32.xlu0 %v2566_v1, %s2436_s24 }
 0x1bb   :  { %315 = vrot.lane.b32.xlu1 %v2566_v1, %s2434_s22 }
 0x1c2   :  { %290 = vrot.lane.b32.xlu0 %v2576_v4, %s2435_s23  ;;  %247 = vrot.lane.b32.xlu2 %v2576_v4, %s2431_s19 }
 0x1c3   :  { %306 = vrot.lane.b32.xlu1 %v2566_v1, %s2437_s26 }
 0x1ca   :  { %279 = vrot.lane.b32.xlu0 %v2566_v1, %s2438_s5  ;;  %272 = vrot.lane.b32.xlu2 %v2576_v4, %s2430_s0 }
 0x1cb   :  { %255 = vrot.lane.b32.xlu1 %v2576_v4, %s2427_s25 }
 0x1d2   :  { %281 = vrot.lane.b32.xlu0 %v2576_v4, %s2438_s5  ;;  %326 = vrot.lane.b32.xlu2 %v2576_v4, %s2436_s24 }
 0x1da   :  { %299 = vrot.lane.b32.xlu2 %v2576_v4, %s2432_s20 }
 0x1e2   :  { %253 = vrot.lane.b32.xlu2 %v2566_v1, %s2427_s25 }
 0x204   :  { %v246_v5 = vpop.permute.xlu2 %245 }
 0x205   :  { %251 = vst.msk [vmem:[#allocation3] sm:$0xff] %vm240_vm6, %v246_v5 }
 0x20c   :  { %v262_v6 = vpop.permute.xlu2 %261  ;;  %v350_v7 = vld [vmem:[#allocation3] sm:$0xff] }
 0x20d   :  { %268 = vst.msk [vmem:[#allocation2 + $0x10] sm:$0xff] %vm240_vm6, %v262_v6  ;;  %2068 = vmatpush.xpose.msk.msra.mxu1 %vm240_vm6, %v350_v7 }
 0x210   :  { %2069 = vmatmul.msk.f32.vlgmr.msra.gmra.mxu1 %vm240_vm6, %v342_v8 }
 0x214   :  { %v289_v9 = vpop.permute.xlu2 %288  ;;  %v344_v26 = vld [vmem:[#allocation2 + $0x10] sm:$0xff] }
 0x215   :  { %295 = vst.msk [vmem:[#allocation2 + $0x20] sm:$0xff] %vm240_vm6, %v289_v9 }
 0x21c   :  { %v248_v11 = vpop.permute.xlu2 %247  ;;  %v271_v12 = vpop.permute.xlu0 %270  ;;  %v346_v21 = vld [vmem:[#allocation2 + $0x20] sm:$0xff] }
 0x21d   :  { %252 = vst.msk [vmem:[#allocation3 + $0x8] sm:$0xff] %vm240_vm6, %v248_v11  ;;  %v298_v13 = vpop.permute.xlu1 %297 }
 0x21e   :  { %304 = vst.msk [vmem:[#allocation3 + $0x20] sm:$0xff] %vm240_vm6, %v298_v13 }
 0x21f   :  { %277 = vst.msk [vmem:[#allocation3 + $0x10] sm:$0xff] %vm240_vm6, %v271_v12 }
 0x224   :  { %v273_v14 = vpop.permute.xlu2 %272  ;;  %v264_v15 = vpop.permute.xlu0 %263  ;;  %v351_v16 = vld [vmem:[#allocation3 + $0x8] sm:$0xff] }
 0x225   :  { %278 = vst.msk [vmem:[#allocation3 + $0x18] sm:$0xff] %vm240_vm6, %v273_v14  ;;  %v318_v17 = vpop.permute.xlu1 %317  ;;  %2070 = vmatpush.xpose.msk.msra.mxu3 %vm240_vm6, %v351_v16  ;;  %v354_v18 = vld [vmem:[#allocation3 + $0x20] sm:$0xff] }
 0x226   :  { %323 = vst.msk [vmem:[#allocation2 + $0x38] sm:$0xff] %vm240_vm6, %v318_v17  ;;  %2076 = vmatpush.xpose.msk.msra.mxu2 %vm240_vm6, %v354_v18  ;;  %v352_v19 = vld [vmem:[#allocation3 + $0x10] sm:$0xff] }
 0x227   :  { %269 = vst.msk [vmem:[#allocation2 + $0x18] sm:$0xff] %vm240_vm6, %v264_v15 }
 0x228   :  { %2071 = vmatmul.msk.f32.vlgmr.msra.gmra.mxu3 %vm240_vm6, %v343_v20 }
 0x229   :  { %2072 = vmatpush.xpose.msk.msrb.mxu3 %vm240_vm6, %v352_v19  ;;  %2077 = vmatmul.msk.f32.vlgmr.msra.gmra.mxu2 %vm240_vm6, %v346_v21 }
 0x22c   :  { %v327_v22 = vpop.permute.xlu2 %326  ;;  %v325_v23 = vpop.permute.xlu0 %324  ;;  %v353_v24 = vld [vmem:[#allocation3 + $0x18] sm:$0xff] }
 0x22d   :  { %332 = vst.msk [vmem:[#allocation3 + $0x38] sm:$0xff] %vm240_vm6, %v327_v22  ;;  %v316_v25 = vpop.permute.xlu1 %315  ;;  %2074 = vmatpush.xpose.msk.msrb.mxu1 %vm240_vm6, %v353_v24  ;;  %v349_v33 = vld [vmem:[#allocation2 + $0x38] sm:$0xff] }
 0x22e   :  { %322 = vst.msk [vmem:[#allocation2 + $0x30] sm:$0xff] %vm240_vm6, %v316_v25  ;;  %v345_v27 = vld [vmem:[#allocation2 + $0x18] sm:$0xff] }
 0x22f   :  { %331 = vst.msk [vmem:[#allocation3 + $0x30] sm:$0xff] %vm240_vm6, %v325_v23 }
 0x230   :  { %2073 = vmatmul.msk.f32.vlgmr.msrb.gmra.mxu3 %vm240_vm6, %v344_v26  ;;  %2075 = vmatmul.msk.f32.vlgmr.msrb.gmra.mxu1 %vm240_vm6, %v345_v27 }
 0x234   :  { %v300_v28 = vpop.permute.xlu2 %299  ;;  %v291_v29 = vpop.permute.xlu0 %290  ;;  %v357_v30 = vld [vmem:[#allocation3 + $0x38] sm:$0xff] }
 0x235   :  { %305 = vst.msk [vmem:[#allocation3 + $0x28] sm:$0xff] %vm240_vm6, %v300_v28  ;;  %v307_v31 = vpop.permute.xlu1 %306  ;;  %2082 = vmatpush.xpose.msk.msrb.mxu2 %vm240_vm6, %v357_v30  ;;  %v348_v34 = vld [vmem:[#allocation2 + $0x30] sm:$0xff] }
 0x236   :  { %313 = vst.msk [vmem:[#allocation4 + $0x20] sm:$0xff] %vm240_vm6, %v307_v31  ;;  %v356_v32 = vld [vmem:[#allocation3 + $0x30] sm:$0xff] }
 0x237   :  { %296 = vst.msk [vmem:[#allocation2 + $0x28] sm:$0xff] %vm240_vm6, %v291_v29  ;;  %2080 = vmatpush.xpose.msk.msra.mxu1 %vm240_vm6, %v356_v32 }
 0x238   :  { %2083 = vmatmul.msk.f32.vlgmr.msrb.gmra.mxu2 %vm240_vm6, %v349_v33 }
 0x23a   :  { %2081 = vmatmul.msk.f32.vlgmr.msra.gmra.mxu1 %vm240_vm6, %v348_v34 }
 0x23c   :  { %v254_v35 = vpop.permute.xlu2 %253  ;;  %v280_v36 = vpop.permute.xlu0 %279  ;;  %v355_v37 = vld [vmem:[#allocation3 + $0x28] sm:$0xff] }
 0x23d   :  { %259 = vst.msk [vmem:[#allocation4] sm:$0xff] %vm240_vm6, %v254_v35  ;;  %v256_v38 = vpop.permute.xlu1 %255  ;;  %2078 = vmatpush.xpose.msk.msra.mxu3 %vm240_vm6, %v355_v37  ;;  %v658_v44 = vld [vmem:[#allocation4 + $0x20] sm:$0xff] }
 0x23e   :  { %260 = vst.msk [vmem:[#allocation4 + $0x8] sm:$0xff] %vm240_vm6, %v256_v38  ;;  %v347_v39 = vld [vmem:[#allocation2 + $0x28] sm:$0xff] }
 0x23f   :  { %286 = vst.msk [vmem:[#allocation4 + $0x10] sm:$0xff] %vm240_vm6, %v280_v36 }
 0x240   :  { %2079 = vmatmul.msk.f32.vlgmr.msra.gmra.mxu3 %vm240_vm6, %v347_v39 }
 0x244   :  { %v282_v40 = vpop.permute.xlu0 %281  ;;  %v654_v41 = vld [vmem:[#allocation4] sm:$0xff] }
 0x245   :  { %287 = vst.msk [vmem:[#allocation4 + $0x18] sm:$0xff] %vm240_vm6, %v282_v40  ;;  %680 = vmatpush.msrb.mxu3 %v654_v41  ;;  %v655_v42 = vld [vmem:[#allocation4 + $0x8] sm:$0xff] }
 0x246   :  { %703 = vmatpush.msrb.mxu0 %v655_v42  ;;  %v656_v45 = vld [vmem:[#allocation4 + $0x10] sm:$0xff] }
 0x247   :  { %772 = vmatpush.msra.mxu3 %v658_v44  ;;  %726 = vmatpush.msrb.mxu1 %v656_v45 }
 0x24c   :  { %v657_v46 = vld [vmem:[#allocation4 + $0x18] sm:$0xff] }
 0x24d   :  { %749 = vmatpush.msra.mxu2 %v657_v46 }
 0x28d   :  { %v381_v51 = vpop.f32.mrf.mxu1 }
 0x28e   :  { %v382_v52 = vadd.f32 %v381_v51, %v2647_v50 }
 0x290   :  { %v566_v53 = vsel %vm240_vm6, %v382_v52, -inf }
 0x291   :  { %567 = vmax.xlane.f32.xlu2 %v566_v53 }
 0x2ab   :  { %v407_v57 = vpop.f32.mrf.mxu3 }
 0x2ac   :  { %v408_v58 = vadd.f32 %v407_v57, %v2651_v56  ;;  %v485_v59 = vpop.f32.mrf.mxu2 }
 0x2ad   :  { %v486_v60 = vadd.f32 %v485_v59, %v2647_v50  ;;  %v459_v61 = vpop.f32.mrf.mxu1 }
 0x2ae   :  { %v460_v62 = vadd.f32 %v459_v61, %v2651_v56  ;;  %v569_v63 = vsel %vm240_vm6, %v408_v58, -inf }
 0x2af   :  { %570 = vmax.xlane.f32.xlu1 %v569_v63  ;;  %v578_v3 = vsel %vm240_vm6, %v486_v60, -inf }
 0x2b0   :  { %579 = vmax.xlane.f32.xlu0 %v578_v3  ;;  %v575_v5 = vsel %vm240_vm6, %v460_v62, -inf }
 0x2b1   :  { %576 = vmax.xlane.f32.xlu2 %v575_v5 }
 0x2b3   :  { %v433_v6 = vpop.f32.mrf.mxu3 }
 0x2b4   :  { %v434_v7 = vadd.f32 %v433_v6, %v2647_v50 }
 0x2b6   :  { %v572_v8 = vsel %vm240_vm6, %v434_v7, -inf }
 0x2b7   :  { %v537_v9 = vpop.f32.mrf.mxu1  ;;  %573 = vmax.xlane.f32.xlu1 %v572_v8 }
 0x2b8   :  { %v538_v11 = vadd.f32 %v537_v9, %v2647_v50 }
 0x2ba   :  { %v584_v12 = vsel %vm240_vm6, %v538_v11, -inf }
 0x2bb   :  { %585 = vmax.xlane.f32.xlu0 %v584_v12  ;;  %v563_v13 = vpop.f32.mrf.mxu2 }
 0x2bc   :  { %v564_v14 = vadd.f32 %v563_v13, %v2651_v56 }
 0x2be   :  { %v587_v15 = vsel %vm240_vm6, %v564_v14, -inf }
 0x2bf   :  { %588 = vmax.xlane.f32.xlu2 %v587_v15 }
 0x2c3   :  { %v511_v16 = vpop.f32.mrf.mxu3 }
 0x2c4   :  { %v512_v17 = vadd.f32 %v511_v16, %v2651_v56 }
 0x2c6   :  { %v581_v18 = vsel %vm240_vm6, %v512_v17, -inf }
 0x2c7   :  { %582 = vmax.xlane.f32.xlu1 %v581_v18 }
 0x304   :  { %v568_v19 = vpop.xlane.xlu2 %567 }
 0x305   :  { %v590_v20 = vsub.f32 %v382_v52, %v568_v19 }
 0x307   :  { %v598_v21 = vmul.f32 1.442695, %v590_v20 }
 0x309   :  { %2195 = vpow2.f32 %v598_v21 }
 0x30f   :  { %v2196_v22 = vpop.eup %2195 }
 0x310   :  { %v614_v23 = vsel %vm240_vm6, %v2196_v22, 0.0 }
 0x311   :  { %615 = vadd.xlane.f32.xlu0 %v614_v23 }
 0x322   :  { %v571_v24 = vpop.xlane.xlu1 %570 }
 0x323   :  { %v591_v25 = vsub.f32 %v408_v58, %v571_v24  ;;  %v580_v26 = vpop.xlane.xlu0 %579 }
 0x324   :  { %v594_v27 = vsub.f32 %v486_v60, %v580_v26  ;;  %v577_v28 = vpop.xlane.xlu2 %576 }
 0x325   :  { %v600_v29 = vmul.f32 1.442695, %v591_v25  ;;  %v593_v30 = vsub.f32 %v460_v62, %v577_v28 }
 0x326   :  { %v606_v31 = vmul.f32 1.442695, %v594_v27 }
 0x327   :  { %2197 = vpow2.f32 %v600_v29  ;;  %v604_v32 = vmul.f32 1.442695, %v593_v30 }
 0x328   :  { %2199 = vpow2.f32 %v606_v31 }
 0x329   :  { %2201 = vpow2.f32 %v604_v32 }
 0x32a   :  { %v574_v35 = vpop.xlane.xlu1 %573 }
 0x32b   :  { %v592_v42 = vsub.f32 %v434_v7, %v574_v35 }
 0x32d   :  { %v2198_v33 = vpop.eup %2197  ;;  %v602_v47 = vmul.f32 1.442695, %v592_v42  ;;  %v124_v42 = vld [vmem:[%s3093_s4] sm:$0xff] }
 0x32e   :  { %v2200_v34 = vpop.eup %2199  ;;  %v586_v36 = vpop.xlane.xlu0 %585  ;;  %v617_v37 = vsel %vm240_vm6, %v2198_v33, 0.0 }
 0x32f   :  { %v2202_v38 = vpop.eup %2201  ;;  %v596_v39 = vsub.f32 %v538_v11, %v586_v36  ;;  %618 = vadd.xlane.f32.xlu0 %v617_v37  ;;  %v626_v40 = vsel %vm240_vm6, %v2200_v34, 0.0 }
 0x330   :  { %627 = vadd.xlane.f32.xlu1 %v626_v40  ;;  %v623_v41 = vsel %vm240_vm6, %v2202_v38, 0.0  ;;  %v126_v40 = vld [vmem:[%s3093_s4 + $0x10] sm:$0xff] }
 0x331   :  { %v610_v44 = vmul.f32 1.442695, %v596_v39  ;;  %624 = vadd.xlane.f32.xlu2 %v623_v41  ;;  %v127_v39 = vld [vmem:[%s3093_s4 + $0x18] sm:$0xff]  ;;  %v125_v41 = vld [vmem:[%s3093_s4 + $0x8] sm:$0xff] }
 0x332   :  { %v589_v45 = vpop.xlane.xlu2 %588 }
 0x333   :  { %2203 = vpow2.f32 %v610_v44  ;;  %v597_v46 = vsub.f32 %v564_v14, %v589_v45 }
 0x335   :  { %v612_v48 = vmul.f32 1.442695, %v597_v46 }
 0x337   :  { %2205 = vpow2.f32 %v612_v48 }
 0x338   :  { %2207 = vpow2.f32 %v602_v47 }
 0x339   :  { %v2204_v49 = vpop.eup %2203 }
 0x33a   :  { %v632_v51 = vsel %vm240_vm6, %v2204_v49, 0.0  ;;  %v583_v57 = vpop.xlane.xlu1 %582 }
 0x33b   :  { %633 = vadd.xlane.f32.xlu1 %v632_v51  ;;  %v595_v58 = vsub.f32 %v512_v17, %v583_v57 }
 0x33d   :  { %v2206_v52 = vpop.eup %2205  ;;  %v608_v59 = vmul.f32 1.442695, %v595_v58 }
 0x33e   :  { %v635_v53 = vsel %vm240_vm6, %v2206_v52, 0.0  ;;  %v2208_v54 = vpop.eup %2207 }
 0x33f   :  { %636 = vadd.xlane.f32.xlu0 %v635_v53  ;;  %v620_v55 = vsel %vm240_vm6, %v2208_v54, 0.0  ;;  %2209 = vpow2.f32 %v608_v59  ;;  %v2178_v53 = vld [vmem:[#allocation11] ss:$0 sm:$0xff] }
 0x343   :  { %621 = vadd.xlane.f32.xlu1 %v620_v55 }
 0x345   :  { %v2210_v60 = vpop.eup %2209 }
 0x346   :  { %v629_v61 = vsel %vm240_vm6, %v2210_v60, 0.0 }
 0x349   :  { %333 = vrot.lane.b32.xlu2 %v2566_v1, %s2440_s6 }
 0x353   :  { %335 = vrot.lane.b32.xlu0 %v2576_v4, %s2440_s6 }
 0x35c   :  { %308 = vrot.lane.b32.xlu1 %v2576_v4, %s2437_s26 }
 0x372   :  { %630 = vadd.xlane.f32.xlu2 %v629_v61 }
 0x384   :  { %v616_v62 = vpop.xlane.xlu0 %615 }
 0x385   :  { %2211 = vrcp.f32 %v616_v62 }
 0x38b   :  { %v2212_v63 = vpop.eup %2211 }
 0x38c   :  { %v646_v3 = vmul.f32 %v2212_v63, %v2196_v22 }
 0x38e   :  { %2084 = vmatmul.msk.f32.vlgmr.msrb.gmra.mxu3 %vm240_vm6, %v646_v3 }
 0x38f   :  { %901 = vmatpush.msrb.mxu3 %v127_v39 }
 0x391   :  { %902 = vmatpush.msrb.mxu3 %v126_v40  ;;  %v138_v40 = vld [vmem:[%s3098_s9 + $0x18] sm:$0xff] }
 0x393   :  { %903 = vmatpush.msrb.mxu3 %v125_v41 }
 0x395   :  { %904 = vmatpush.msrb.mxu3 %v124_v42 }
 0x3a2   :  { %v619_v1 = vpop.xlane.xlu0 %618 }
 0x3a3   :  { %v628_v5 = vpop.xlane.xlu1 %627  ;;  %2213 = vrcp.f32 %v619_v1 }
 0x3a4   :  { %2215 = vrcp.f32 %v628_v5  ;;  %v625_v6 = vpop.xlane.xlu2 %624 }
 0x3a5   :  { %2217 = vrcp.f32 %v625_v6 }
 0x3a9   :  { %v2214_v4 = vpop.eup %2213 }
 0x3aa   :  { %v2216_v7 = vpop.eup %2215  ;;  %v647_v8 = vmul.f32 %v2214_v4, %v2198_v33 }
 0x3ab   :  { %v2218_v9 = vpop.eup %2217  ;;  %v650_v11 = vmul.f32 %v2216_v7, %v2200_v34 }
 0x3ac   :  { %v649_v12 = vmul.f32 %v2218_v9, %v2202_v38  ;;  %v334_v13 = vpop.permute.xlu2 %333  ;;  %2085 = vmatmul.msk.f32.vlgmr.msrb.gmra.mxu0 %vm240_vm6, %v647_v8  ;;  %v133_v9 = vld [vmem:[%s3096_s7 + $0x18] sm:$0xff] }
 0x3ad   :  { %340 = vst.msk [vmem:[#allocation4 + $0x30] sm:$0xff] %vm240_vm6, %v334_v13  ;;  %2088 = vmatmul.msk.f32.vlgmr.msra.gmra.mxu3 %vm240_vm6, %v650_v11  ;;  %v132_v11 = vld [vmem:[%s3096_s7 + $0x10] sm:$0xff]  ;;  %v130_v13 = vld [vmem:[%s3096_s7] sm:$0xff] }
 0x3ae   :  { %v634_v14 = vpop.xlane.xlu1 %633  ;;  %2087 = vmatmul.msk.f32.vlgmr.msra.gmra.mxu2 %vm240_vm6, %v649_v12  ;;  %v131_v12 = vld [vmem:[%s3096_s7 + $0x8] sm:$0xff] }
 0x3b2   :  { %v637_v18 = vpop.xlane.xlu0 %636 }
 0x3b4   :  { %v660_v15 = vld [vmem:[#allocation4 + $0x30] sm:$0xff] }
 0x3b5   :  { %818 = vmatpush.msra.mxu1 %v660_v15 }
 0x3b6   :  { %v622_v16 = vpop.xlane.xlu1 %621 }
 0x3b7   :  { %2219 = vrcp.f32 %v622_v16 }
 0x3b8   :  { %2221 = vrcp.f32 %v634_v14 }
 0x3b9   :  { %2223 = vrcp.f32 %v637_v18 }
 0x3bd   :  { %v2220_v17 = vpop.eup %2219 }
 0x3be   :  { %v648_v19 = vmul.f32 %v2220_v17, %v2208_v54  ;;  %v2222_v20 = vpop.eup %2221 }
 0x3bf   :  { %v652_v22 = vmul.f32 %v2222_v20, %v2204_v49  ;;  %v2224_v23 = vpop.eup %2223 }
 0x3c0   :  { %2086 = vmatmul.msk.f32.vlgmr.msrb.gmra.mxu1 %vm240_vm6, %v648_v19  ;;  %v653_v24 = vmul.f32 %v2224_v23, %v2206_v52 }
 0x3c5   :  { %v336_v21 = vpop.permute.xlu0 %335 }
 0x3c6   :  { %341 = vst.msk [vmem:[#allocation4 + $0x38] sm:$0xff] %vm240_vm6, %v336_v21 }
 0x3c8   :  { %2090 = vmatmul.msk.f32.vlgmr.msra.gmra.mxu1 %vm240_vm6, %v652_v22 }
 0x3cd   :  { %v661_v25 = vld [vmem:[#allocation4 + $0x38] sm:$0xff] }
 0x3ce   :  { %v309_v26 = vpop.permute.xlu1 %308  ;;  %841 = vmatpush.msrb.mxu2 %v661_v25 }
 0x3cf   :  { %314 = vst.msk [vmem:[#allocation4 + $0x28] sm:$0xff] %vm240_vm6, %v309_v26  ;;  %2091 = vmatmul.msk.f32.vlgmr.msrb.gmra.mxu2 %vm240_vm6, %v653_v24 }
 0x3d6   :  { %v659_v27 = vld [vmem:[#allocation4 + $0x28] sm:$0xff] }
 0x3d7   :  { %795 = vmatpush.msra.mxu0 %v659_v27  ;;  %v967_v27 = vperm.slane %v2557_v43, 2 }
 0x3d9   :  { %996 = vmatpush.msrb.mxu0 %v133_v9 }
 0x3db   :  { %997 = vmatpush.msrb.mxu0 %v132_v11 }
 0x3dd   :  { %998 = vmatpush.msrb.mxu0 %v131_v12 }
 0x3df   :  { %999 = vmatpush.msrb.mxu0 %v130_v13 }
 0x3e5   :  { %v631_v28 = vpop.xlane.xlu2 %630 }
 0x3e6   :  { %2225 = vrcp.f32 %v631_v28 }
 0x3ec   :  { %v2226_v29 = vpop.eup %2225 }
 0x3ed   :  { %v651_v30 = vmul.f32 %v2226_v29, %v2210_v60  ;;  %v972_v29 = vperm.slane %v2557_v43, 3  ;;  %v140_v43 = vld [vmem:[%s3098_s9 + $0x28] sm:$0xff] }
 0x3ef   :  { %2089 = vmatmul.msk.f32.vlgmr.msra.gmra.mxu0 %vm240_vm6, %v651_v30 }
 0x411   :  { %v682_v31 = vpop.f32.mrf.mxu3 }
 0x412   :  { %846 = vst.msk [vmem:[#allocation5] sm:$0xff] %vm240_vm6, %v682_v31 }
 0x429   :  { %v705_v32 = vpop.f32.mrf.mxu0 }
 0x42a   :  { %847 = vst.msk [vmem:[#allocation5 + $0x8] sm:$0xff] %vm240_vm6, %v705_v32 }
 0x430   :  { %v774_v33 = vpop.f32.mrf.mxu3 }
 0x431   :  { %861 = vrot.lane.b32.xlu0 %v774_v33, %s2420_s29  ;;  %v751_v35 = vpop.f32.mrf.mxu2 }
 0x43d   :  { %v728_v34 = vpop.f32.mrf.mxu1 }
 0x43e   :  { %850 = vrot.lane.b32.xlu0 %v728_v34, %s2424_s1 }
 0x445   :  { %v820_v36 = vpop.f32.mrf.mxu1 }
 0x446   :  { %872 = vrot.lane.b32.xlu1 %v820_v36, %s3103_s27  ;;  %852 = vrot.lane.b32.xlu0 %v751_v35, %s2424_s1  ;;  %v142_v35 = vld [vmem:[%s3098_s9 + $0x38] sm:$0xff]  ;;  %v141_v36 = vld [vmem:[%s3098_s9 + $0x30] sm:$0xff] }
 0x447   :  { %1024 = vmatpush.msrb.mxu1 %v142_v35 }
 0x449   :  { %1025 = vmatpush.msrb.mxu1 %v141_v36 }
 0x44b   :  { %1026 = vmatpush.msrb.mxu1 %v140_v43 }
 0x452   :  { %v843_v37 = vpop.f32.mrf.mxu2 }
 0x453   :  { %874 = vrot.lane.b32.xlu0 %v843_v37, %s3103_s27 }
 0x46c   :  { %v797_v38 = vpop.f32.mrf.mxu0 }
 0x46d   :  { %863 = vrot.lane.b32.xlu1 %v797_v38, %s2420_s29  ;;  %v139_v38 = vld [vmem:[%s3098_s9 + $0x20] sm:$0xff] }
 0x46e   :  { %1027 = vmatpush.msrb.mxu1 %v139_v38  ;;  %v2817_v38 = vld [vmem:[#allocation12 + $0x4] sm:$0xf] }
 0x470   :  { %1028 = vmatpush.msrb.mxu1 %v138_v40  ;;  %v1128_v40 = vperm.slane %v2817_v38, 0 }
 0x4a3   :  { %v862_v44 = vpop.permute.xlu0 %861 }
 0x4b0   :  { %v851_v45 = vpop.permute.xlu0 %850 }
 0x4b1   :  { %857 = vst.msk [vmem:[#allocation5] sm:$0xff] %vm856_vm9, %v851_v45 }
 0x4b2   :  { %868 = vst.msk [vmem:[#allocation5] sm:$0xff] %vm867_vm10, %v862_v44 }
 0x4b8   :  { %v873_v46 = vpop.permute.xlu1 %872  ;;  %v853_v47 = vpop.permute.xlu0 %852 }
 0x4b9   :  { %879 = vst.msk [vmem:[#allocation5] sm:$0xff] %vm878_vm11, %v873_v46 }
 0x4ba   :  { %858 = vst.msk [vmem:[#allocation5 + $0x8] sm:$0xff] %vm856_vm9, %v853_v47 }
 0x4c0   :  { %v881_v48 = vld [vmem:[#allocation5] sm:$0xff] }
 0x4c1   :  { %2092 = vmatmul.msk.f32.vlgmr.msrb.gmra.mxu3 %vm144_vm0, %v881_v48 }
 0x4c5   :  { %v875_v51 = vpop.permute.xlu0 %874 }
 0x4df   :  { %v864_v49 = vpop.permute.xlu1 %863 }
 0x4e0   :  { %869 = vst.msk [vmem:[#allocation5 + $0x8] sm:$0xff] %vm867_vm10, %v864_v49 }
 0x4e1   :  { %880 = vst.msk [vmem:[#allocation5 + $0x8] sm:$0xff] %vm878_vm11, %v875_v51 }
 0x4e8   :  { %v882_v52 = vld [vmem:[#allocation5 + $0x8] sm:$0xff] }
 0x4e9   :  { %2093 = vmatmul.msk.f32.gmra.mxu3 %vm144_vm0, %v882_v52 }
 0x544   :  { %v906_v54 = vpop.f32.mrf.mxu3 }
 0x545   :  { %v912_v55 = vadd.f32 %v906_v54, %v2529_v0 }
 0x547   :  { %v2721_v57 = vadd.f32 %v2178_v53, %v912_v55 }
 0x549   :  { %v919_v58 = vsel %vm144_vm0, %v2721_v57, 0.0 }
 0x54a   :  { %920 = vadd.xlane.f32.xlu2 %v919_v58  ;;  %v137_v58 = vld [vmem:[%s3098_s9 + $0x10] sm:$0xff] }
 0x54b   :  { %1029 = vmatpush.msrb.mxu1 %v137_v58 }
 0x56c   :  { %v909_v59 = vpop.f32.mrf.mxu3 }
 0x56d   :  { %v913_v60 = vadd.f32 %v909_v59, %v2533_v2  ;;  %v136_v59 = vld [vmem:[%s3098_s9 + $0x8] sm:$0xff] }
 0x56e   :  { %1030 = vmatpush.msrb.mxu1 %v136_v59 }
 0x56f   :  { %v2726_v61 = vadd.f32 %v2178_v53, %v913_v60  ;;  %v135_v60 = vld [vmem:[%s3098_s9] sm:$0xff] }
 0x570   :  { %1031 = vmatpush.msrb.mxu1 %v135_v60 }
 0x571   :  { %v922_v62 = vsel %vm144_vm0, %v2726_v61, 0.0 }
 0x572   :  { %923 = vadd.xlane.f32.xlu1 %v922_v62  ;;  %v2179_v62 = vld [vmem:[%s3097_s8] ss:$0 sm:$0xff] }
 0x5bd   :  { %v921_v63 = vpop.xlane.xlu2 %920 }
 0x5be   :  { %v925_v3 = vmul.f32 %v921_v63, %v2537_v10 }
 0x5c0   :  { %v927_v0 = vsub.f32 %v2721_v57, %v925_v3 }
 0x5c2   :  { %v929_v1 = vmul.f32 %v927_v0, %v927_v0  ;;  %v968_v28 = vmul.f32 %v967_v27, %v927_v0 }
 0x5c4   :  { %v931_v5 = vsel %vm144_vm0, %v929_v1, 0.0 }
 0x5c5   :  { %932 = vadd.xlane.f32.xlu0 %v931_v5 }
 0x5e5   :  { %v924_v6 = vpop.xlane.xlu1 %923 }
 0x5e6   :  { %v926_v4 = vmul.f32 %v924_v6, %v2537_v10 }
 0x5e8   :  { %v2735_v2 = vsub.f32 %v2726_v61, %v926_v4  ;;  %v2180_v4 = vld [vmem:[%s3099_s10] ss:$0 sm:$0xff] }
 0x5ea   :  { %v930_v7 = vmul.f32 %v2735_v2, %v2735_v2  ;;  %v969_v52 = vmul.f32 %v967_v27, %v2735_v2 }
 0x5ec   :  { %v934_v8 = vsel %vm144_vm0, %v930_v7, 0.0 }
 0x5ed   :  { %935 = vadd.xlane.f32.xlu2 %v934_v8 }
 0x638   :  { %v933_v14 = vpop.xlane.xlu0 %932 }
 0x639   :  { %v937_v15 = vmul.f32 0.032258064, %v933_v14 }
 0x63b   :  { %2227 = vrsqrt.f32 %v937_v15  ;;  %vm946_vm12 = vcmp.eq.f32.partialorder %v937_v15, inf  ;;  %v949_v23 = vand.u32 2147483648, %v937_v15  ;;  %vm948_vm13 = vcmp.eq.f32.partialorder %v937_v15, 0.0 }
 0x641   :  { %v2228_v16 = vpop.eup %2227 }
 0x642   :  { %v940_v17 = vmul.f32 %v2228_v16, %v937_v15 }
 0x644   :  { %v941_v18 = vmul.f32 %v2228_v16, %v940_v17 }
 0x646   :  { %v942_v19 = vmul.f32 0.5, %v941_v18 }
 0x648   :  { %v943_v20 = vsub.f32 1.5, %v942_v19 }
 0x64a   :  { %v944_v21 = vmul.f32 %v2228_v16, %v943_v20 }
 0x64c   :  { %v945_v22 = vmul.f32 %v944_v21, %v937_v15 }
 0x64e   :  { %v947_v24 = vsel %vm946_vm12, %v937_v15, %v945_v22 }
 0x64f   :  { %v950_v25 = vsel %vm948_vm13, %v949_v23, %v947_v24  ;;  %v2101_v23 = vld [vmem:[%s3091_s2 + $0x38] sm:$0xff]  ;;  %v2100_v24 = vld [vmem:[%s3091_s2 + $0x30] sm:$0xff] }
 0x650   :  { %v963_v26 = vadd.f32 1e-06, %v950_v25  ;;  %1157 = vmatpush.msra.mxu2 %v2101_v23  ;;  %v2099_v25 = vld [vmem:[%s3091_s2 + $0x28] sm:$0xff] }
 0x652   :  { %2229 = vrcp.f32 %v963_v26  ;;  %1158 = vmatpush.msra.mxu2 %v2100_v24  ;;  %v2098_v26 = vld [vmem:[%s3091_s2 + $0x20] sm:$0xff] }
 0x654   :  { %1159 = vmatpush.msra.mxu2 %v2099_v25 }
 0x656   :  { %1160 = vmatpush.msra.mxu2 %v2098_v26 }
 0x658   :  { %v2230_v30 = vpop.eup %2229 }
 0x659   :  { %v970_v31 = vmul.f32 %v2230_v30, %v968_v28 }
 0x65b   :  { %v973_v32 = vadd.f32 %v972_v29, %v970_v31 }
 0x65d   :  { %2094 = vmatmul.msk.f32.vlgmr.msrb.gmra.mxu0 %vm144_vm0, %v973_v32 }
 0x660   :  { %v936_v33 = vpop.xlane.xlu2 %935 }
 0x661   :  { %v938_v34 = vmul.f32 0.032258064, %v936_v33 }
 0x663   :  { %2231 = vrsqrt.f32 %v938_v34  ;;  %vm958_vm14 = vcmp.eq.f32.partialorder %v938_v34, inf  ;;  %v961_v47 = vand.u32 2147483648, %v938_v34  ;;  %vm960_vm15 = vcmp.eq.f32.partialorder %v938_v34, 0.0 }
 0x669   :  { %v2232_v37 = vpop.eup %2231 }
 0x66a   :  { %v952_v39 = vmul.f32 %v2232_v37, %v938_v34 }
 0x66c   :  { %v953_v41 = vmul.f32 %v2232_v37, %v952_v39 }
 0x66e   :  { %v954_v42 = vmul.f32 0.5, %v953_v41 }
 0x670   :  { %v955_v44 = vsub.f32 1.5, %v954_v42  ;;  %v1133_v42 = vperm.slane %v2817_v38, 1 }
 0x672   :  { %v956_v45 = vmul.f32 %v2232_v37, %v955_v44 }
 0x674   :  { %v957_v46 = vmul.f32 %v956_v45, %v938_v34 }
 0x676   :  { %v959_v48 = vsel %vm958_vm14, %v938_v34, %v957_v46 }
 0x677   :  { %v962_v49 = vsel %vm960_vm15, %v961_v47, %v959_v48 }
 0x678   :  { %v964_v51 = vadd.f32 1e-06, %v962_v49 }
 0x67a   :  { %2233 = vrcp.f32 %v964_v51 }
 0x680   :  { %v2234_v53 = vpop.eup %2233 }
 0x681   :  { %v971_v54 = vmul.f32 %v2234_v53, %v969_v52 }
 0x683   :  { %v974_v55 = vadd.f32 %v972_v29, %v971_v54 }
 0x685   :  { %2095 = vmatmul.msk.f32.gmra.mxu0 %vm144_vm0, %v974_v55 }
 0x6da   :  { %v1001_v63 = vpop.f32.mrf.mxu0 }
 0x6db   :  { %v1002_v3 = vadd.f32 %v2179_v62, %v1001_v63 }
 0x6dd   :  { %v1007_v0 = vmax.f32 %v1002_v3, 0.0 }
 0x6df   :  { %2096 = vmatmul.msk.f32.vlgmr.msrb.gmra.mxu1 %vm1009_vm1, %v1007_v0 }
 0x702   :  { %v1004_v1 = vpop.f32.mrf.mxu0 }
 0x703   :  { %v1005_v5 = vadd.f32 %v2179_v62, %v1004_v1 }
 0x705   :  { %v1008_v6 = vmax.f32 %v1005_v5, 0.0 }
 0x707   :  { %2097 = vmatmul.msk.f32.gmra.mxu1 %vm1009_vm1, %v1008_v6  ;;  %v2181_v6 = vld [vmem:[%s3092_s3 + $0x1] ss:$0 sm:$0xff]  ;;  %s3105_s3 = smov 24  }
 0x75c   :  { %v1033_v2 = vpop.f32.mrf.mxu1 }
 0x75d   :  { %v1039_v7 = vadd.f32 %v1033_v2, %v2721_v57 }
 0x75f   :  { %v2790_v8 = vadd.f32 %v2180_v4, %v1039_v7 }
 0x761   :  { %v1080_v9 = vsel %vm144_vm0, %v2790_v8, 0.0 }
 0x762   :  { %1081 = vadd.xlane.f32.xlu2 %v1080_v9 }
 0x784   :  { %v1036_v11 = vpop.f32.mrf.mxu1 }
 0x785   :  { %v1040_v12 = vadd.f32 %v1036_v11, %v2726_v61 }
 0x787   :  { %v2795_v13 = vadd.f32 %v2180_v4, %v1040_v12 }
 0x789   :  { %v1083_v14 = vsel %vm144_vm0, %v2795_v13, 0.0 }
 0x78a   :  { %1084 = vadd.xlane.f32.xlu2 %v1083_v14 }
 0x7d5   :  { %v1082_v15 = vpop.xlane.xlu2 %1081 }
 0x7d6   :  { %v1086_v16 = vmul.f32 %v1082_v15, %v2537_v10 }
 0x7d8   :  { %v1088_v57 = vsub.f32 %v2790_v8, %v1086_v16 }
 0x7da   :  { %v1090_v17 = vmul.f32 %v1088_v57, %v1088_v57  ;;  %v1129_v41 = vmul.f32 %v1128_v40, %v1088_v57 }
 0x7dc   :  { %v1092_v18 = vsel %vm144_vm0, %v1090_v17, 0.0 }
 0x7dd   :  { %1093 = vadd.xlane.f32.xlu2 %v1092_v18 }
 0x7fd   :  { %v1085_v19 = vpop.xlane.xlu2 %1084 }
 0x7fe   :  { %v1087_v20 = vmul.f32 %v1085_v19, %v2537_v10 }
 0x800   :  { %v1089_v61 = vsub.f32 %v2795_v13, %v1087_v20 }
 0x802   :  { %v1091_v21 = vmul.f32 %v1089_v61, %v1089_v61  ;;  %v1130_v3 = vmul.f32 %v1128_v40, %v1089_v61 }
 0x804   :  { %v1095_v22 = vsel %vm144_vm0, %v1091_v21, 0.0 }
 0x805   :  { %1096 = vadd.xlane.f32.xlu2 %v1095_v22 }
 0x850   :  { %v1094_v27 = vpop.xlane.xlu2 %1093 }
 0x851   :  { %v1098_v28 = vmul.f32 0.032258064, %v1094_v27 }
 0x853   :  { %2235 = vrsqrt.f32 %v1098_v28  ;;  %vm1107_vm2 = vcmp.eq.f32.partialorder %v1098_v28, inf  ;;  %v1110_v36 = vand.u32 2147483648, %v1098_v28  ;;  %vm1109_vm3 = vcmp.eq.f32.partialorder %v1098_v28, 0.0 }
 0x859   :  { %v2236_v29 = vpop.eup %2235 }
 0x85a   :  { %v1101_v30 = vmul.f32 %v2236_v29, %v1098_v28 }
 0x85c   :  { %v1102_v31 = vmul.f32 %v2236_v29, %v1101_v30 }
 0x85e   :  { %v1103_v32 = vmul.f32 0.5, %v1102_v31 }
 0x860   :  { %v1104_v33 = vsub.f32 1.5, %v1103_v32 }
 0x862   :  { %v1105_v34 = vmul.f32 %v2236_v29, %v1104_v33 }
 0x864   :  { %v1106_v35 = vmul.f32 %v1105_v34, %v1098_v28 }
 0x866   :  { %v1108_v43 = vsel %vm1107_vm2, %v1098_v28, %v1106_v35 }
 0x867   :  { %v1111_v37 = vsel %vm1109_vm3, %v1110_v36, %v1108_v43 }
 0x868   :  { %v1124_v39 = vadd.f32 1e-06, %v1111_v37 }
 0x86a   :  { %2237 = vrcp.f32 %v1124_v39 }
 0x870   :  { %v2238_v44 = vpop.eup %2237 }
 0x871   :  { %v1131_v45 = vmul.f32 %v2238_v44, %v1129_v41 }
 0x873   :  { %v1134_v46 = vadd.f32 %v1133_v42, %v1131_v45 }
 0x875   :  { %2121 = vmatmul.msk.f32.vlgmr.msra.gmra.mxu2 %vm144_vm0, %v1134_v46 }
 0x878   :  { %v1097_v47 = vpop.xlane.xlu2 %1096 }
 0x879   :  { %v1099_v48 = vmul.f32 0.032258064, %v1097_v47 }
 0x87b   :  { %2239 = vrsqrt.f32 %v1099_v48  ;;  %vm1119_vm4 = vcmp.eq.f32.partialorder %v1099_v48, inf  ;;  %v1122_v59 = vand.u32 2147483648, %v1099_v48  ;;  %vm1121_vm5 = vcmp.eq.f32.partialorder %v1099_v48, 0.0 }
 0x881   :  { %v2240_v49 = vpop.eup %2239 }
 0x882   :  { %v1113_v51 = vmul.f32 %v2240_v49, %v1099_v48 }
 0x884   :  { %v1114_v52 = vmul.f32 %v2240_v49, %v1113_v51 }
 0x886   :  { %v1115_v53 = vmul.f32 0.5, %v1114_v52 }
 0x888   :  { %v1116_v54 = vsub.f32 1.5, %v1115_v53 }
 0x88a   :  { %v1117_v55 = vmul.f32 %v2240_v49, %v1116_v54 }
 0x88c   :  { %v1118_v58 = vmul.f32 %v1117_v55, %v1099_v48 }
 0x88e   :  { %v1120_v60 = vsel %vm1119_vm4, %v1099_v48, %v1118_v58 }
 0x88f   :  { %v1123_v62 = vsel %vm1121_vm5, %v1122_v59, %v1120_v60 }
 0x890   :  { %v1125_v63 = vadd.f32 1e-06, %v1123_v62 }
 0x892   :  { %2241 = vrcp.f32 %v1125_v63 }
 0x898   :  { %v2242_v0 = vpop.eup %2241 }
 0x899   :  { %v1132_v1 = vmul.f32 %v2242_v0, %v1130_v3 }
 0x89b   :  { %v1135_v5 = vadd.f32 %v1133_v42, %v1132_v1 }
 0x89d   :  { %2122 = vmatmul.msk.f32.gmra.mxu2 %vm144_vm0, %v1135_v5 }
 0x8f8   :  { %v1162_v4 = vpop.f32.mrf.mxu2 }
 0x8f9   :  { %v2826_v2 = vadd.f32 %v2181_v6, %v1162_v4 }
 0x8fb   :  { %1168 = vst.msk [vmem:[#allocation2] sm:$0xff] %vm240_vm6, %v2826_v2  ;;  %1188 = vrot.lane.b32.xlu2 %v2826_v2, %s2433_s21  ;;  %1196 = vrot.lane.b32.xlu0 %v2826_v2, %s2430_s0 }
 0x8fc   :  { %1172 = vrot.lane.b32.xlu1 %v2826_v2, %s2431_s19 }
 0x902   :  { %v1260_v18 = vld [vmem:[#allocation2] sm:$0xff] }
 0x904   :  { %1244 = vrot.lane.b32.xlu1 %v2826_v2, %s2436_s24 }
 0x90c   :  { %1236 = vrot.lane.b32.xlu1 %v2826_v2, %s2434_s22 }
 0x920   :  { %v1165_v7 = vpop.f32.mrf.mxu2 }
 0x921   :  { %v2840_v9 = vadd.f32 %v2181_v6, %v1165_v7 }
 0x923   :  { %1169 = vst.msk [vmem:[#allocation2 + $0x8] sm:$0xff] %vm240_vm6, %v2840_v9  ;;  %1238 = vrot.lane.b32.xlu1 %v2840_v9, %s2434_s22  ;;  %1174 = vrot.lane.b32.xlu2 %v2840_v9, %s2431_s19 }
 0x924   :  { %1198 = vrot.lane.b32.xlu0 %v2840_v9, %s2430_s0 }
 0x92a   :  { %v1261_v24 = vld [vmem:[#allocation2 + $0x8] sm:$0xff] }
 0x92b   :  { %1214 = vrot.lane.b32.xlu1 %v2840_v9, %s2435_s23  ;;  %1246 = vrot.lane.b32.xlu2 %v2840_v9, %s2436_s24 }
 0x92c   :  { %1190 = vrot.lane.b32.xlu0 %v2840_v9, %s2433_s21 }
 0x933   :  { %1180 = vrot.lane.b32.xlu1 %v2826_v2, %s2427_s25  ;;  %1212 = vrot.lane.b32.xlu2 %v2826_v2, %s2435_s23 }
 0x934   :  { %1220 = vrot.lane.b32.xlu0 %v2826_v2, %s2432_s20 }
 0x93b   :  { %1204 = vrot.lane.b32.xlu2 %v2826_v2, %s2438_s5 }
 0x93c   :  { %1222 = vrot.lane.b32.xlu0 %v2840_v9, %s2432_s20 }
 0x955   :  { %v1189_v11 = vpop.permute.xlu2 %1188 }
 0x956   :  { %1194 = vst.msk [vmem:[#allocation2 + $0x10] sm:$0xff] %vm240_vm6, %v1189_v11 }
 0x95d   :  { %v1262_v17 = vld [vmem:[#allocation2 + $0x10] sm:$0xff] }
 0x96d   :  { %v1197_v12 = vpop.permute.xlu0 %1196 }
 0x96e   :  { %1202 = vst.msk [vmem:[#allocation3 + $0x10] sm:$0xff] %vm240_vm6, %v1197_v12  ;;  %v1173_v14 = vpop.permute.xlu1 %1172 }
 0x96f   :  { %1178 = vst.msk [vmem:[#allocation3] sm:$0xff] %vm240_vm6, %v1173_v14 }
 0x975   :  { %v1270_v15 = vld [vmem:[#allocation3 + $0x10] sm:$0xff] }
 0x976   :  { %v1245_v16 = vpop.permute.xlu1 %1244  ;;  %v1268_v57 = vld [vmem:[#allocation3] sm:$0xff]  ;;  %2127 = vmatpush.xpose.msk.msrb.mxu2 %vm240_vm6, %v1270_v15 }
 0x977   :  { %1250 = vst.msk [vmem:[#allocation3 + $0x30] sm:$0xff] %vm240_vm6, %v1245_v16  ;;  %2123 = vmatpush.xpose.msk.msra.mxu3 %vm240_vm6, %v1268_v57 }
 0x979   :  { %2128 = vmatmul.msk.f32.vlgmr.msrb.gmra.mxu2 %vm240_vm6, %v1262_v17 }
 0x97a   :  { %2124 = vmatmul.msk.f32.vlgmr.msra.gmra.mxu3 %vm240_vm6, %v1260_v18 }
 0x97d   :  { %v1175_v19 = vpop.permute.xlu2 %1174 }
 0x97e   :  { %v1237_v20 = vpop.permute.xlu1 %1236  ;;  %v1274_v61 = vld [vmem:[#allocation3 + $0x30] sm:$0xff]  ;;  %1179 = vst.msk [vmem:[#allocation3 + $0x8] sm:$0xff] %vm240_vm6, %v1175_v19 }
 0x97f   :  { %1242 = vst.msk [vmem:[#allocation2 + $0x30] sm:$0xff] %vm240_vm6, %v1237_v20  ;;  %2135 = vmatpush.xpose.msk.msra.mxu2 %vm240_vm6, %v1274_v61 }
 0x985   :  { %v1247_v21 = vpop.permute.xlu2 %1246  ;;  %v1269_v22 = vld [vmem:[#allocation3 + $0x8] sm:$0xff] }
 0x986   :  { %v1266_v23 = vld [vmem:[#allocation2 + $0x30] sm:$0xff]  ;;  %1251 = vst.msk [vmem:[#allocation3 + $0x38] sm:$0xff] %vm240_vm6, %v1247_v21  ;;  %2125 = vmatpush.xpose.msk.msra.mxu0 %vm240_vm6, %v1269_v22 }
 0x987   :  { %2136 = vmatmul.msk.f32.vlgmr.msra.gmra.mxu2 %vm240_vm6, %v1266_v23 }
 0x989   :  { %2126 = vmatmul.msk.f32.vlgmr.msra.gmra.mxu0 %vm240_vm6, %v1261_v24 }
 0x98d   :  { %v1213_v25 = vpop.permute.xlu2 %1212  ;;  %v1275_v33 = vld [vmem:[#allocation3 + $0x38] sm:$0xff] }
 0x98e   :  { %1218 = vst.msk [vmem:[#allocation2 + $0x20] sm:$0xff] %vm240_vm6, %v1213_v25 }
 0x995   :  { %v1239_v26 = vpop.permute.xlu1 %1238  ;;  %v1205_v27 = vpop.permute.xlu2 %1204  ;;  %v1264_v41 = vld [vmem:[#allocation2 + $0x20] sm:$0xff] }
 0x996   :  { %1243 = vst.msk [vmem:[#allocation2 + $0x38] sm:$0xff] %vm240_vm6, %v1239_v26  ;;  %v1199_v28 = vpop.permute.xlu0 %1198 }
 0x997   :  { %1203 = vst.msk [vmem:[#allocation3 + $0x18] sm:$0xff] %vm240_vm6, %v1199_v28 }
 0x998   :  { %1210 = vst.msk [vmem:[#allocation4 + $0x10] sm:$0xff] %vm240_vm6, %v1205_v27 }
 0x99d   :  { %v1215_v29 = vpop.permute.xlu1 %1214  ;;  %v1267_v40 = vld [vmem:[#allocation2 + $0x38] sm:$0xff] }
 0x99e   :  { %1219 = vst.msk [vmem:[#allocation2 + $0x28] sm:$0xff] %vm240_vm6, %v1215_v29  ;;  %v1191_v30 = vpop.permute.xlu0 %1190  ;;  %v1271_v31 = vld [vmem:[#allocation3 + $0x18] sm:$0xff] }
 0x99f   :  { %1195 = vst.msk [vmem:[#allocation2 + $0x18] sm:$0xff] %vm240_vm6, %v1191_v30  ;;  %2129 = vmatpush.xpose.msk.msrb.mxu3 %vm240_vm6, %v1271_v31  ;;  %v1574_v32 = vld [vmem:[#allocation4 + $0x10] sm:$0xff] }
 0x9a0   :  { %1644 = vmatpush.msrb.mxu2 %v1574_v32 }
 0x9a3   :  { %2137 = vmatpush.xpose.msk.msra.mxu3 %vm240_vm6, %v1275_v33 }
 0x9a5   :  { %v1181_v34 = vpop.permute.xlu1 %1180  ;;  %v1265_v44 = vld [vmem:[#allocation2 + $0x28] sm:$0xff] }
 0x9a6   :  { %1186 = vst.msk [vmem:[#allocation4] sm:$0xff] %vm240_vm6, %v1181_v34  ;;  %v1221_v35 = vpop.permute.xlu0 %1220  ;;  %v1263_v36 = vld [vmem:[#allocation2 + $0x18] sm:$0xff] }
 0x9a7   :  { %1226 = vst.msk [vmem:[#allocation3 + $0x20] sm:$0xff] %vm240_vm6, %v1221_v35  ;;  %2130 = vmatmul.msk.f32.vlgmr.msrb.gmra.mxu3 %vm240_vm6, %v1263_v36 }
 0x9ad   :  { %v1572_v43 = vld [vmem:[#allocation4] sm:$0xff] }
 0x9ae   :  { %v1223_v37 = vpop.permute.xlu0 %1222  ;;  %v1272_v39 = vld [vmem:[#allocation3 + $0x20] sm:$0xff] }
 0x9af   :  { %1227 = vst.msk [vmem:[#allocation3 + $0x28] sm:$0xff] %vm240_vm6, %v1223_v37  ;;  %2131 = vmatpush.xpose.msk.msrb.mxu0 %vm240_vm6, %v1272_v39  ;;  %2138 = vmatmul.msk.f32.vlgmr.msra.gmra.mxu3 %vm240_vm6, %v1267_v40 }
 0x9b2   :  { %2132 = vmatmul.msk.f32.vlgmr.msrb.gmra.mxu0 %vm240_vm6, %v1264_v41 }
 0x9b3   :  { %1598 = vmatpush.msra.mxu0 %v1572_v43 }
 0x9b6   :  { %v1273_v42 = vld [vmem:[#allocation3 + $0x28] sm:$0xff] }
 0x9b7   :  { %2133 = vmatpush.xpose.msk.msra.mxu1 %vm240_vm6, %v1273_v42 }
 0x9ba   :  { %2134 = vmatmul.msk.f32.vlgmr.msra.gmra.mxu1 %vm240_vm6, %v1265_v44 }
 0x9fc   :  { %v1351_v45 = vpop.f32.mrf.mxu2 }
 0x9fd   :  { %v1299_v46 = vpop.f32.mrf.mxu3  ;;  %v1352_v47 = vadd.f32 %v1351_v45, %v2647_v50 }
 0x9fe   :  { %v1300_v48 = vadd.f32 %v1299_v46, %v2647_v50 }
 0x9ff   :  { %v1490_v49 = vsel %vm240_vm6, %v1352_v47, -inf }
 0xa00   :  { %v1484_v51 = vsel %vm240_vm6, %v1300_v48, -inf  ;;  %1491 = vmax.xlane.f32.xlu2 %v1490_v49 }
 0xa01   :  { %1485 = vmax.xlane.f32.xlu0 %v1484_v51 }
 0xa06   :  { %v1325_v52 = vpop.f32.mrf.mxu0 }
 0xa07   :  { %v1326_v53 = vadd.f32 %v1325_v52, %v2651_v56 }
 0xa09   :  { %v1487_v54 = vsel %vm240_vm6, %v1326_v53, -inf }
 0xa0a   :  { %v1455_v55 = vpop.f32.mrf.mxu2  ;;  %1488 = vmax.xlane.f32.xlu0 %v1487_v54 }
 0xa0b   :  { %v1456_v58 = vadd.f32 %v1455_v55, %v2647_v50 }
 0xa0d   :  { %v1502_v59 = vsel %vm240_vm6, %v1456_v58, -inf }
 0xa0e   :  { %1503 = vmax.xlane.f32.xlu2 %v1502_v59 }
 0xa2a   :  { %v1377_v60 = vpop.f32.mrf.mxu3 }
 0xa2b   :  { %v1378_v62 = vadd.f32 %v1377_v60, %v2651_v56 }
 0xa2d   :  { %v1493_v63 = vsel %vm240_vm6, %v1378_v62, -inf }
 0xa2e   :  { %1494 = vmax.xlane.f32.xlu1 %v1493_v63 }
 0xa2f   :  { %v1403_v3 = vpop.f32.mrf.mxu0 }
 0xa30   :  { %v1404_v0 = vadd.f32 %v1403_v3, %v2647_v50 }
 0xa32   :  { %v1481_v1 = vpop.f32.mrf.mxu3  ;;  %v1496_v4 = vsel %vm240_vm6, %v1404_v0, -inf }
 0xa33   :  { %v1482_v5 = vadd.f32 %v1481_v1, %v2651_v56 }
 0xa35   :  { %v1505_v6 = vsel %vm240_vm6, %v1482_v5, -inf }
 0xa36   :  { %1506 = vmax.xlane.f32.xlu2 %v1505_v6  ;;  %1497 = vmax.xlane.f32.xlu1 %v1496_v4 }
 0xa37   :  { %v1429_v7 = vpop.f32.mrf.mxu1 }
 0xa38   :  { %v1430_v11 = vadd.f32 %v1429_v7, %v2651_v56 }
 0xa3a   :  { %v1499_v12 = vsel %vm240_vm6, %v1430_v11, -inf }
 0xa3b   :  { %1500 = vmax.xlane.f32.xlu0 %v1499_v12 }
 0xa4e   :  { %1206 = vrot.lane.b32.xlu2 %v2840_v9, %s2438_s5 }
 0xa4f   :  { %1252 = vrot.lane.b32.xlu0 %v2826_v2, %s2440_s6 }
 0xa57   :  { %1182 = vrot.lane.b32.xlu0 %v2840_v9, %s2427_s25 }
 0xa5f   :  { %1228 = vrot.lane.b32.xlu0 %v2826_v2, %s2437_s26 }
 0xa73   :  { %v1492_v50 = vpop.xlane.xlu2 %1491 }
 0xa74   :  { %v1486_v14 = vpop.xlane.xlu0 %1485  ;;  %v1510_v15 = vsub.f32 %v1352_v47, %v1492_v50 }
 0xa75   :  { %v1508_v56 = vsub.f32 %v1300_v48, %v1486_v14 }
 0xa76   :  { %v1520_v16 = vmul.f32 1.442695, %v1510_v15 }
 0xa77   :  { %v1516_v57 = vmul.f32 1.442695, %v1508_v56 }
 0xa78   :  { %2243 = vpow2.f32 %v1520_v16 }
 0xa79   :  { %2245 = vpow2.f32 %v1516_v57 }
 0xa7d   :  { %v1489_v17 = vpop.xlane.xlu0 %1488 }
 0xa7e   :  { %v2922_v18 = vpop.eup %2243  ;;  %v1509_v19 = vsub.f32 %v1326_v53, %v1489_v17 }
 0xa7f   :  { %v1538_v20 = vsel %vm240_vm6, %v2922_v18, 0.0  ;;  %v2926_v21 = vpop.eup %2245 }
 0xa80   :  { %v1518_v61 = vmul.f32 1.442695, %v1509_v19  ;;  %1539 = vadd.xlane.f32.xlu1 %v1538_v20  ;;  %v1532_v22 = vsel %vm240_vm6, %v2926_v21, 0.0 }
 0xa81   :  { %v1504_v24 = vpop.xlane.xlu2 %1503 }
 0xa82   :  { %2247 = vpow2.f32 %v1518_v61  ;;  %v1514_v27 = vsub.f32 %v1456_v58, %v1504_v24 }
 0xa84   :  { %v1528_v29 = vmul.f32 1.442695, %v1514_v27 }
 0xa88   :  { %v2928_v2 = vpop.eup %2247 }
 0xa89   :  { %1533 = vadd.xlane.f32.xlu0 %v1532_v22  ;;  %v1535_v23 = vsel %vm240_vm6, %v2928_v2, 0.0 }
 0xa8a   :  { %1536 = vadd.xlane.f32.xlu2 %v1535_v23 }
 0xaa1   :  { %v1495_v25 = vpop.xlane.xlu1 %1494 }
 0xaa2   :  { %v1511_v26 = vsub.f32 %v1378_v62, %v1495_v25  ;;  %1254 = vrot.lane.b32.xlu2 %v2840_v9, %s2440_s6 }
 0xaa4   :  { %v1522_v28 = vmul.f32 1.442695, %v1511_v26 }
 0xaa6   :  { %2249 = vpow2.f32 %v1522_v28 }
 0xaa7   :  { %2251 = vpow2.f32 %v1528_v29 }
 0xaa9   :  { %v1498_v30 = vpop.xlane.xlu1 %1497  ;;  %v1507_v31 = vpop.xlane.xlu2 %1506 }
 0xaaa   :  { %v1512_v32 = vsub.f32 %v1404_v0, %v1498_v30  ;;  %v1515_v33 = vsub.f32 %v1482_v5, %v1507_v31 }
 0xaac   :  { %v2936_v34 = vpop.eup %2249  ;;  %v1524_v35 = vmul.f32 1.442695, %v1512_v32  ;;  %v1530_v37 = vmul.f32 1.442695, %v1515_v33 }
 0xaad   :  { %v1541_v36 = vsel %vm240_vm6, %v2936_v34, 0.0  ;;  %v2252_v42 = vpop.eup %2251 }
 0xaae   :  { %2253 = vpow2.f32 %v1524_v35  ;;  %1542 = vadd.xlane.f32.xlu0 %v1541_v36  ;;  %v1501_v43 = vpop.xlane.xlu0 %1500  ;;  %v1550_v46 = vsel %vm240_vm6, %v2252_v42, 0.0  ;;  %v2106_v35 = vld [vmem:[%s3093_s4 + $0x38] sm:$0xff]  ;;  %v2105_v36 = vld [vmem:[%s3093_s4 + $0x30] sm:$0xff] }
 0xaaf   :  { %v1513_v39 = vsub.f32 %v1430_v11, %v1501_v43  ;;  %2255 = vpow2.f32 %v1530_v37  ;;  %v2104_v43 = vld [vmem:[%s3093_s4 + $0x28] sm:$0xff]  ;;  %v2103_v37 = vld [vmem:[%s3093_s4 + $0x20] sm:$0xff] }
 0xab1   :  { %v1526_v40 = vmul.f32 1.442695, %v1513_v39  ;;  %v1207_v41 = vpop.permute.xlu2 %1206 }
 0xab2   :  { %1211 = vst.msk [vmem:[#allocation4 + $0x18] sm:$0xff] %vm240_vm6, %v1207_v41 }
 0xab3   :  { %2257 = vpow2.f32 %v1526_v40 }
 0xab4   :  { %v2254_v44 = vpop.eup %2253 }
 0xab5   :  { %v1544_v45 = vsel %vm240_vm6, %v2254_v44, 0.0  ;;  %v2256_v47 = vpop.eup %2255 }
 0xab6   :  { %1545 = vadd.xlane.f32.xlu1 %v1544_v45  ;;  %1551 = vadd.xlane.f32.xlu0 %v1550_v46  ;;  %v1553_v52 = vsel %vm240_vm6, %v2256_v47, 0.0  ;;  %v2182_v46 = vld [vmem:[#allocation11 + $0x1] ss:$0 sm:$0xff] }
 0xab9   :  { %v1575_v48 = vld [vmem:[#allocation4 + $0x18] sm:$0xff]  ;;  %v2943_v49 = vpop.eup %2257 }
 0xaba   :  { %1667 = vmatpush.msrb.mxu3 %v1575_v48  ;;  %v1547_v51 = vsel %vm240_vm6, %v2943_v49, 0.0 }
 0xabe   :  { %1548 = vadd.xlane.f32.xlu1 %v1547_v51  ;;  %1554 = vadd.xlane.f32.xlu0 %v1553_v52 }
 0xac1   :  { %v1253_v53 = vpop.permute.xlu0 %1252 }
 0xac2   :  { %1258 = vst.msk [vmem:[#allocation4 + $0x30] sm:$0xff] %vm240_vm6, %v1253_v53 }
 0xac9   :  { %v1183_v54 = vpop.permute.xlu0 %1182  ;;  %v1578_v55 = vld [vmem:[#allocation4 + $0x30] sm:$0xff] }
 0xaca   :  { %1187 = vst.msk [vmem:[#allocation4 + $0x8] sm:$0xff] %vm240_vm6, %v1183_v54  ;;  %1736 = vmatpush.msra.mxu2 %v1578_v55 }
 0xad1   :  { %v1229_v58 = vpop.permute.xlu0 %1228  ;;  %v1573_v59 = vld [vmem:[#allocation4 + $0x8] sm:$0xff] }
 0xad2   :  { %1234 = vst.msk [vmem:[#allocation4 + $0x20] sm:$0xff] %vm240_vm6, %v1229_v58  ;;  %1621 = vmatpush.msrb.mxu1 %v1573_v59 }
 0xad7   :  { %1230 = vrot.lane.b32.xlu1 %v2840_v9, %s2437_s26 }
 0xad9   :  { %v1576_v60 = vld [vmem:[#allocation4 + $0x20] sm:$0xff] }
 0xada   :  { %1690 = vmatpush.msrb.mxu0 %v1576_v60 }
 0xaf3   :  { %v1540_v62 = vpop.xlane.xlu1 %1539 }
 0xaf4   :  { %2259 = vrcp.f32 %v1540_v62 }
 0xafa   :  { %v2260_v63 = vpop.eup %2259 }
 0xafb   :  { %v1566_v3 = vmul.f32 %v2260_v63, %v2922_v18 }
 0xafc   :  { %v1534_v0 = vpop.xlane.xlu0 %1533 }
 0xafd   :  { %2261 = vrcp.f32 %v1534_v0  ;;  %2141 = vmatmul.msk.f32.vlgmr.msrb.gmra.mxu2 %vm240_vm6, %v1566_v3  ;;  %v1537_v1 = vpop.xlane.xlu2 %1536 }
 0xafe   :  { %2263 = vrcp.f32 %v1537_v1 }
 0xb03   :  { %v2262_v5 = vpop.eup %2261 }
 0xb04   :  { %v2264_v6 = vpop.eup %2263  ;;  %v1564_v4 = vmul.f32 %v2262_v5, %v2926_v21  ;;  %v2110_v5 = vld [vmem:[%s3096_s7 + $0x38] sm:$0xff] }
 0xb05   :  { %v1565_v7 = vmul.f32 %v2264_v6, %v2928_v2  ;;  %v1255_v9 = vpop.permute.xlu2 %1254  ;;  %v2109_v6 = vld [vmem:[%s3096_s7 + $0x30] sm:$0xff] }
 0xb06   :  { %2139 = vmatmul.msk.f32.vlgmr.msra.gmra.mxu0 %vm240_vm6, %v1564_v4  ;;  %1259 = vst.msk [vmem:[#allocation4 + $0x38] sm:$0xff] %vm240_vm6, %v1255_v9  ;;  %v2108_v4 = vld [vmem:[%s3096_s7 + $0x28] sm:$0xff] }
 0xb07   :  { %2140 = vmatmul.msk.f32.vlgmr.msrb.gmra.mxu1 %vm240_vm6, %v1565_v7  ;;  %1816 = vmatpush.msra.mxu0 %v2106_v35  ;;  %v2107_v7 = vld [vmem:[%s3096_s7 + $0x20] sm:$0xff] }
 0xb09   :  { %1817 = vmatpush.msra.mxu0 %v2105_v36 }
 0xb0b   :  { %1818 = vmatpush.msra.mxu0 %v2104_v43  ;;  %v1887_v43 = vperm.slane %v2817_v38, 3 }
 0xb0d   :  { %v1579_v11 = vld [vmem:[#allocation4 + $0x38] sm:$0xff]  ;;  %1819 = vmatpush.msra.mxu0 %v2103_v37 }
 0xb0e   :  { %1759 = vmatpush.msra.mxu3 %v1579_v11 }
 0xb21   :  { %v1543_v12 = vpop.xlane.xlu0 %1542 }
 0xb22   :  { %2265 = vrcp.f32 %v1543_v12 }
 0xb28   :  { %v2266_v50 = vpop.eup %2265 }
 0xb29   :  { %v1567_v14 = vmul.f32 %v2266_v50, %v2936_v34  ;;  %v1546_v15 = vpop.xlane.xlu1 %1545  ;;  %v1552_v16 = vpop.xlane.xlu0 %1551 }
 0xb2a   :  { %2267 = vrcp.f32 %v1546_v15 }
 0xb2b   :  { %2269 = vrcp.f32 %v1552_v16  ;;  %2142 = vmatmul.msk.f32.vlgmr.msrb.gmra.mxu3 %vm240_vm6, %v1567_v14 }
 0xb30   :  { %v2268_v56 = vpop.eup %2267 }
 0xb31   :  { %v2270_v57 = vpop.eup %2269  ;;  %v1568_v17 = vmul.f32 %v2268_v56, %v2254_v44  ;;  %v1555_v18 = vpop.xlane.xlu0 %1554  ;;  %v2119_v56 = vld [vmem:[%s3098_s9 + $0x78] sm:$0xff] }
 0xb32   :  { %v1570_v19 = vmul.f32 %v2270_v57, %v2252_v42  ;;  %2271 = vrcp.f32 %v1555_v18  ;;  %v1549_v21 = vpop.xlane.xlu1 %1548  ;;  %v2118_v57 = vld [vmem:[%s3098_s9 + $0x70] sm:$0xff]  ;;  %1938 = vmatpush.msrb.mxu2 %v2119_v56  ;;  %v2117_v18 = vld [vmem:[%s3098_s9 + $0x68] sm:$0xff] }
 0xb33   :  { %2143 = vmatmul.msk.f32.vlgmr.msrb.gmra.mxu0 %vm240_vm6, %v1568_v17  ;;  %2273 = vrcp.f32 %v1549_v21 }
 0xb34   :  { %2145 = vmatmul.msk.f32.vlgmr.msra.gmra.mxu2 %vm240_vm6, %v1570_v19 }
 0xb35   :  { %1939 = vmatpush.msrb.mxu2 %v2118_v57 }
 0xb37   :  { %1940 = vmatpush.msrb.mxu2 %v2117_v18 }
 0xb38   :  { %v2272_v20 = vpop.eup %2271 }
 0xb39   :  { %v1571_v61 = vmul.f32 %v2272_v20, %v2256_v47  ;;  %v2274_v22 = vpop.eup %2273 }
 0xb3a   :  { %v1569_v23 = vmul.f32 %v2274_v22, %v2943_v49  ;;  %v2115_v22 = vld [vmem:[%s3098_s9 + $0x58] sm:$0xff] }
 0xb3b   :  { %2146 = vmatmul.msk.f32.vlgmr.msra.gmra.mxu3 %vm240_vm6, %v1571_v61  ;;  %v2116_v61 = vld [vmem:[%s3098_s9 + $0x60] sm:$0xff] }
 0xb3c   :  { %1941 = vmatpush.msrb.mxu2 %v2116_v61 }
 0xb3e   :  { %1942 = vmatpush.msrb.mxu2 %v2115_v22 }
 0xb49   :  { %v1231_v2 = vpop.permute.xlu1 %1230 }
 0xb4a   :  { %1235 = vst.msk [vmem:[#allocation4 + $0x28] sm:$0xff] %vm240_vm6, %v1231_v2 }
 0xb51   :  { %v1577_v24 = vld [vmem:[#allocation4 + $0x28] sm:$0xff] }
 0xb52   :  { %1713 = vmatpush.msra.mxu1 %v1577_v24 }
 0xb53   :  { %2144 = vmatmul.msk.f32.vlgmr.msra.gmra.mxu1 %vm240_vm6, %v1569_v23 }
 0xb54   :  { %1911 = vmatpush.msrb.mxu1 %v2110_v5 }
 0xb56   :  { %1912 = vmatpush.msrb.mxu1 %v2109_v6 }
 0xb58   :  { %1913 = vmatpush.msrb.mxu1 %v2108_v4 }
 0xb5a   :  { %1914 = vmatpush.msrb.mxu1 %v2107_v7 }
 0xb80   :  { %v1646_v25 = vpop.f32.mrf.mxu2 }
 0xb81   :  { %1768 = vrot.lane.b32.xlu2 %v1646_v25, %s2424_s1 }
 0xb83   :  { %v1600_v26 = vpop.f32.mrf.mxu0 }
 0xb84   :  { %1764 = vst.msk [vmem:[#allocation5] sm:$0xff] %vm240_vm6, %v1600_v26  ;;  %v1623_v27 = vpop.f32.mrf.mxu1 }
 0xb85   :  { %1765 = vst.msk [vmem:[#allocation5 + $0x8] sm:$0xff] %vm240_vm6, %v1623_v27 }
 0xbae   :  { %v1669_v28 = vpop.f32.mrf.mxu3 }
 0xbaf   :  { %1770 = vrot.lane.b32.xlu1 %v1669_v28, %s2424_s1 }
 0xbb0   :  { %v1692_v29 = vpop.f32.mrf.mxu0 }
 0xbb1   :  { %1778 = vrot.lane.b32.xlu2 %v1692_v29, %s2420_s29 }
 0xbb7   :  { %v1738_v30 = vpop.f32.mrf.mxu2 }
 0xbb8   :  { %1788 = vrot.lane.b32.xlu0 %v1738_v30, %s3105_s3 }
 0xbbe   :  { %v1761_v31 = vpop.f32.mrf.mxu3 }
 0xbbf   :  { %1790 = vrot.lane.b32.xlu1 %v1761_v31, %s3105_s3 }
 0xbd0   :  { %v1715_v32 = vpop.f32.mrf.mxu1 }
 0xbd1   :  { %1780 = vrot.lane.b32.xlu2 %v1715_v32, %s2420_s29  ;;  %v1882_v32 = vperm.slane %v2817_v38, 2  ;;  %v2113_v38 = vld [vmem:[%s3098_s9 + $0x48] sm:$0xff] }
 0xbdb   :  { %v1769_v33 = vpop.permute.xlu2 %1768 }
 0xbdc   :  { %1774 = vst.msk [vmem:[#allocation5] sm:$0xff] %vm856_vm9, %v1769_v33 }
 0xc0b   :  { %v1779_v34 = vpop.permute.xlu2 %1778 }
 0xc0c   :  { %1784 = vst.msk [vmem:[#allocation5] sm:$0xff] %vm867_vm10, %v1779_v34 }
 0xc21   :  { %v1771_v39 = vpop.permute.xlu1 %1770 }
 0xc22   :  { %1775 = vst.msk [vmem:[#allocation5 + $0x8] sm:$0xff] %vm856_vm9, %v1771_v39 }
 0xc2a   :  { %v1789_v40 = vpop.permute.xlu0 %1788 }
 0xc2b   :  { %1794 = vst.msk [vmem:[#allocation5] sm:$0xff] %vm878_vm11, %v1789_v40  ;;  %v1781_v41 = vpop.permute.xlu2 %1780 }
 0xc2c   :  { %1785 = vst.msk [vmem:[#allocation5 + $0x8] sm:$0xff] %vm867_vm10, %v1781_v41 }
 0xc31   :  { %v1791_v42 = vpop.permute.xlu1 %1790 }
 0xc32   :  { %v1796_v44 = vld [vmem:[#allocation5] sm:$0xff]  ;;  %1795 = vst.msk [vmem:[#allocation5 + $0x8] sm:$0xff] %vm878_vm11, %v1791_v42 }
 0xc33   :  { %2147 = vmatmul.msk.f32.vlgmr.msra.gmra.mxu0 %vm144_vm0, %v1796_v44 }
 0xc39   :  { %v1797_v45 = vld [vmem:[#allocation5 + $0x8] sm:$0xff] }
 0xc3b   :  { %2148 = vmatmul.msk.f32.gmra.mxu0 %vm144_vm0, %v1797_v45 }
 0xcb0   :  { %v1821_v47 = vpop.f32.mrf.mxu0 }
 0xcb1   :  { %v1827_v48 = vadd.f32 %v1821_v47, %v2790_v8 }
 0xcb3   :  { %v2997_v49 = vadd.f32 %v2182_v46, %v1827_v48  ;;  %v2114_v48 = vld [vmem:[%s3098_s9 + $0x50] sm:$0xff] }
 0xcb4   :  { %1943 = vmatpush.msrb.mxu2 %v2114_v48 }
 0xcb5   :  { %v1834_v51 = vsel %vm144_vm0, %v2997_v49, 0.0 }
 0xcb6   :  { %1835 = vadd.xlane.f32.xlu2 %v1834_v51  ;;  %1944 = vmatpush.msrb.mxu2 %v2113_v38  ;;  %v2112_v51 = vld [vmem:[%s3098_s9 + $0x40] sm:$0xff] }
 0xcb8   :  { %v1824_v52 = vpop.f32.mrf.mxu0  ;;  %1945 = vmatpush.msrb.mxu2 %v2112_v51 }
 0xcb9   :  { %v1828_v53 = vadd.f32 %v1824_v52, %v2795_v13  ;;  %v2183_v52 = vld [vmem:[%s3097_s8 + $0x1] ss:$0 sm:$0xff] }
 0xcbb   :  { %v3002_v54 = vadd.f32 %v2182_v46, %v1828_v53 }
 0xcbd   :  { %v1837_v55 = vsel %vm144_vm0, %v3002_v54, 0.0 }
 0xcbe   :  { %1838 = vadd.xlane.f32.xlu1 %v1837_v55 }
 0xd29   :  { %v1836_v58 = vpop.xlane.xlu2 %1835 }
 0xd2a   :  { %v1840_v59 = vmul.f32 %v1836_v58, %v2537_v10 }
 0xd2c   :  { %v1842_v8 = vsub.f32 %v2997_v49, %v1840_v59 }
 0xd2e   :  { %v1844_v60 = vmul.f32 %v1842_v8, %v1842_v8  ;;  %v1883_v36 = vmul.f32 %v1882_v32, %v1842_v8 }
 0xd30   :  { %v1846_v62 = vsel %vm144_vm0, %v1844_v60, 0.0 }
 0xd31   :  { %v1839_v63 = vpop.xlane.xlu1 %1838  ;;  %1847 = vadd.xlane.f32.xlu0 %v1846_v62  ;;  %v2184_v62 = vld [vmem:[%s3099_s10 + $0x1] ss:$0 sm:$0xff]  ;;  %s2442_s10 = smov [#allocation14]  }
 0xd32   :  { %v1841_v3 = vmul.f32 %v1839_v63, %v2537_v10 }
 0xd34   :  { %v3011_v13 = vsub.f32 %v3002_v54, %v1841_v3 }
 0xd36   :  { %v1845_v0 = vmul.f32 %v3011_v13, %v3011_v13  ;;  %v1884_v44 = vmul.f32 %v1882_v32, %v3011_v13 }
 0xd38   :  { %v1849_v1 = vsel %vm144_vm0, %v1845_v0, 0.0 }
 0xd39   :  { %1850 = vadd.xlane.f32.xlu2 %v1849_v1 }
 0xda4   :  { %v1848_v9 = vpop.xlane.xlu0 %1847 }
 0xda5   :  { %v1852_v11 = vmul.f32 0.032258064, %v1848_v9 }
 0xda7   :  { %2275 = vrsqrt.f32 %v1852_v11  ;;  %vm1861_vm6 = vcmp.eq.f32.partialorder %v1852_v11, inf  ;;  %v1864_v25 = vand.u32 2147483648, %v1852_v11  ;;  %vm1863_vm7 = vcmp.eq.f32.partialorder %v1852_v11, 0.0 }
 0xdac   :  { %v1851_v12 = vpop.xlane.xlu2 %1850 }
 0xdad   :  { %v2276_v50 = vpop.eup %2275  ;;  %v1853_v14 = vmul.f32 0.032258064, %v1851_v12 }
 0xdae   :  { %v1855_v15 = vmul.f32 %v2276_v50, %v1852_v11 }
 0xdaf   :  { %2277 = vrsqrt.f32 %v1853_v14  ;;  %vm1873_vm8 = vcmp.eq.f32.partialorder %v1853_v14, inf  ;;  %v1876_v34 = vand.u32 2147483648, %v1853_v14  ;;  %vm1875_vm9 = vcmp.eq.f32.partialorder %v1853_v14, 0.0 }
 0xdb0   :  { %v1856_v16 = vmul.f32 %v2276_v50, %v1855_v15 }
 0xdb2   :  { %v1857_v17 = vmul.f32 0.5, %v1856_v16 }
 0xdb4   :  { %v1858_v19 = vsub.f32 1.5, %v1857_v17 }
 0xdb5   :  { %v2278_v20 = vpop.eup %2277 }
 0xdb6   :  { %v1859_v21 = vmul.f32 %v2276_v50, %v1858_v19  ;;  %v1867_v2 = vmul.f32 %v2278_v20, %v1853_v14 }
 0xdb8   :  { %v1860_v23 = vmul.f32 %v1859_v21, %v1852_v11  ;;  %v1868_v24 = vmul.f32 %v2278_v20, %v1867_v2 }
 0xdba   :  { %v1862_v26 = vsel %vm1861_vm6, %v1852_v11, %v1860_v23  ;;  %v1869_v27 = vmul.f32 0.5, %v1868_v24 }
 0xdbb   :  { %v1865_v28 = vsel %vm1863_vm7, %v1864_v25, %v1862_v26 }
 0xdbc   :  { %v1878_v29 = vadd.f32 1e-06, %v1865_v28  ;;  %v1870_v30 = vsub.f32 1.5, %v1869_v27 }
 0xdbe   :  { %2279 = vrcp.f32 %v1878_v29  ;;  %v1871_v31 = vmul.f32 %v2278_v20, %v1870_v30 }
 0xdc0   :  { %v1872_v33 = vmul.f32 %v1871_v31, %v1853_v14 }
 0xdc2   :  { %v1874_v35 = vsel %vm1873_vm8, %v1853_v14, %v1872_v33 }
 0xdc3   :  { %v1877_v37 = vsel %vm1875_vm9, %v1876_v34, %v1874_v35 }
 0xdc4   :  { %v2280_v39 = vpop.eup %2279  ;;  %v1879_v40 = vadd.f32 1e-06, %v1877_v37 }
 0xdc5   :  { %v1885_v41 = vmul.f32 %v2280_v39, %v1883_v36 }
 0xdc6   :  { %2281 = vrcp.f32 %v1879_v40  ;;  %v1960_v40 = vld [vmem:[%s3100_s11] sm:$0x3]  ;;  %s2049_s11 = sshll.u32 %s2442_s10, 4  ;;  %s2050_s11 = int_to_ptr.vmem [resolvable:$true] %s2049_s11 }
 0xdc7   :  { %v1888_v42 = vadd.f32 %v1887_v43, %v1885_v41  ;;  %v2040_v38 = vperm.slane %v1960_v40, 1 }
 0xdc9   :  { %2149 = vmatmul.msk.f32.vlgmr.msrb.gmra.mxu1 %vm144_vm0, %v1888_v42 }
 0xdcc   :  { %v2282_v45 = vpop.eup %2281 }
 0xdcd   :  { %v1886_v46 = vmul.f32 %v2282_v45, %v1884_v44  ;;  %v2035_v44 = vperm.slane %v1960_v40, 0 }
 0xdcf   :  { %v1889_v47 = vadd.f32 %v1887_v43, %v1886_v46 }
 0xdd1   :  { %2150 = vmatmul.msk.f32.gmra.mxu1 %vm144_vm0, %v1889_v47 }
 0xe46   :  { %v1916_v53 = vpop.f32.mrf.mxu1 }
 0xe47   :  { %v1917_v55 = vadd.f32 %v2183_v52, %v1916_v53 }
 0xe49   :  { %v1922_v58 = vmax.f32 %v1917_v55, 0.0 }
 0xe4b   :  { %2151 = vmatmul.msk.f32.vlgmr.msrb.gmra.mxu2 %vm1009_vm1, %v1922_v58 }
 0xe4e   :  { %v1919_v59 = vpop.f32.mrf.mxu1 }
 0xe4f   :  { %v1920_v8 = vadd.f32 %v2183_v52, %v1919_v59 }
 0xe51   :  { %v1923_v60 = vmax.f32 %v1920_v8, 0.0 }
 0xe53   :  { %2152 = vmatmul.msk.f32.gmra.mxu2 %vm1009_vm1, %v1923_v60 }
 0xece   :  { %v1947_v63 = vpop.f32.mrf.mxu2 }
 0xecf   :  { %v1953_v3 = vadd.f32 %v1947_v63, %v2997_v49 }
 0xed1   :  { %v1958_v13 = vadd.f32 %v2184_v62, %v1953_v3 }
 0xed3   :  { %v1961_v0 = vsel %vm144_vm0, %v1958_v13, 0.0 }
 0xed4   :  { %1962 = vadd.xlane.f32.xlu1 %v1961_v0 }
 0xed6   :  { %v1950_v1 = vpop.f32.mrf.mxu2 }
 0xed7   :  { %v1954_v5 = vadd.f32 %v1950_v1, %v3002_v54 }
 0xed9   :  { %v1959_v6 = vadd.f32 %v2184_v62, %v1954_v5 }
 0xedb   :  { %v1964_v4 = vsel %vm144_vm0, %v1959_v6, 0.0 }
 0xedc   :  { %1965 = vadd.xlane.f32.xlu0 %v1964_v4 }
 0xf47   :  { %v1963_v7 = vpop.xlane.xlu1 %1962 }
 0xf48   :  { %v1967_v9 = vmul.f32 %v1963_v7, %v2537_v10 }
 0xf4a   :  { %v1969_v11 = vsub.f32 %v1958_v13, %v1967_v9 }
 0xf4c   :  { %v1971_v12 = vmul.f32 %v1969_v11, %v1969_v11  ;;  %v2036_v52 = vmul.f32 %v2035_v44, %v1969_v11 }
 0xf4e   :  { %v1973_v50 = vsel %vm144_vm0, %v1971_v12, 0.0 }
 0xf4f   :  { %1974 = vadd.xlane.f32.xlu2 %v1973_v50  ;;  %v1966_v49 = vpop.xlane.xlu0 %1965 }
 0xf50   :  { %v1968_v14 = vmul.f32 %v1966_v49, %v2537_v10 }
 0xf52   :  { %v3072_v15 = vsub.f32 %v1959_v6, %v1968_v14 }
 0xf54   :  { %v1972_v54 = vmul.f32 %v3072_v15, %v3072_v15  ;;  %v2037_v1 = vmul.f32 %v2035_v44, %v3072_v15 }
 0xf56   :  { %v1976_v16 = vsel %vm144_vm0, %v1972_v54, 0.0 }
 0xf57   :  { %1977 = vadd.xlane.f32.xlu1 %v1976_v16 }
 0xfc2   :  { %v1975_v56 = vpop.xlane.xlu2 %1974 }
 0xfc3   :  { %v1979_v57 = vmul.f32 0.032258064, %v1975_v56 }
 0xfc5   :  { %2283 = vrsqrt.f32 %v1979_v57  ;;  %vm1988_vm10 = vcmp.eq.f32.partialorder %v1979_v57, inf  ;;  %v1991_v26 = vand.u32 2147483648, %v1979_v57  ;;  %vm1990_vm11 = vcmp.eq.f32.partialorder %v1979_v57, 0.0 }
 0xfca   :  { %v1978_v17 = vpop.xlane.xlu1 %1977 }
 0xfcb   :  { %v2284_v18 = vpop.eup %2283  ;;  %v1980_v19 = vmul.f32 0.032258064, %v1978_v17 }
 0xfcc   :  { %v1982_v20 = vmul.f32 %v2284_v18, %v1979_v57 }
 0xfcd   :  { %2285 = vrsqrt.f32 %v1980_v19  ;;  %vm2000_vm12 = vcmp.eq.f32.partialorder %v1980_v19, inf  ;;  %v2003_v34 = vand.u32 2147483648, %v1980_v19  ;;  %vm2002_vm13 = vcmp.eq.f32.partialorder %v1980_v19, 0.0 }
 0xfce   :  { %v1983_v61 = vmul.f32 %v2284_v18, %v1982_v20 }
 0xfd0   :  { %v1984_v21 = vmul.f32 0.5, %v1983_v61 }
 0xfd2   :  { %v1985_v2 = vsub.f32 1.5, %v1984_v21 }
 0xfd3   :  { %v2286_v10 = vpop.eup %2285 }
 0xfd4   :  { %v1986_v22 = vmul.f32 %v2284_v18, %v1985_v2  ;;  %v1994_v23 = vmul.f32 %v2286_v10, %v1980_v19 }
 0xfd6   :  { %v1987_v24 = vmul.f32 %v1986_v22, %v1979_v57  ;;  %v1995_v25 = vmul.f32 %v2286_v10, %v1994_v23 }
 0xfd8   :  { %v1989_v27 = vsel %vm1988_vm10, %v1979_v57, %v1987_v24  ;;  %v1996_v28 = vmul.f32 0.5, %v1995_v25 }
 0xfd9   :  { %v1992_v29 = vsel %vm1990_vm11, %v1991_v26, %v1989_v27 }
 0xfda   :  { %v2005_v30 = vadd.f32 1e-06, %v1992_v29  ;;  %v1997_v31 = vsub.f32 1.5, %v1996_v28 }
 0xfdc   :  { %2287 = vrcp.f32 %v2005_v30  ;;  %v1998_v32 = vmul.f32 %v2286_v10, %v1997_v31  ;;  %v2018_v42 = vand.u32 2147483648, %v2005_v30  ;;  %v2016_v46 = vand.u32 2147483647, %v2005_v30 }
 0xfdd   :  { %vm2012_vm15 = vweird.f32 %v2005_v30 }
 0xfde   :  { %v1999_v33 = vmul.f32 %v1998_v32, %v1980_v19  ;;  %v2019_v51 = vor.u32 1.1754944e-38, %v2018_v42  ;;  %vm2017_vm2 = vcmp.eq.f32.partialorder %v2016_v46, 8.507059e+37 }
 0xfe0   :  { %v2001_v35 = vsel %vm2000_vm12, %v1980_v19, %v1999_v33 }
 0xfe1   :  { %v2004_v36 = vsel %vm2002_vm13, %v2003_v34, %v2001_v35 }
 0xfe2   :  { %v2288_v43 = vpop.eup %2287  ;;  %v2006_v37 = vadd.f32 1e-06, %v2004_v36 }
 0xfe3   :  { %v2008_v39 = vmul.f32 %v2288_v43, %v2005_v30  ;;  %vm2013_vm14 = vweird.f32 %v2288_v43 }
 0xfe4   :  { %2289 = vrcp.f32 %v2006_v37  ;;  %vm2014_vm1 = vmor %vm2012_vm15, %vm2013_vm14  ;;  %v2032_v60 = vand.u32 2147483648, %v2006_v37  ;;  %v2030_v63 = vand.u32 2147483647, %v2006_v37  ;;  %vm2026_vm4 = vweird.f32 %v2006_v37 }
 0xfe5   :  { %v2009_v41 = vsub.f32 1.0, %v2008_v39 }
 0xfe6   :  { %v2033_v0 = vor.u32 1.1754944e-38, %v2032_v60  ;;  %vm2031_vm6 = vcmp.eq.f32.partialorder %v2030_v63, 8.507059e+37 }
 0xfe7   :  { %v2010_v45 = vmul.f32 %v2288_v43, %v2009_v41 }
 0xfe9   :  { %v2011_v47 = vadd.f32 %v2288_v43, %v2010_v45 }
 0xfea   :  { %v2290_v48 = vpop.eup %2289 }
 0xfeb   :  { %v2015_v53 = vsel %vm2014_vm1, %v2288_v43, %v2011_v47  ;;  %v2022_v55 = vmul.f32 %v2290_v48, %v2006_v37  ;;  %vm2027_vm3 = vweird.f32 %v2290_v48 }
 0xfec   :  { %v2020_v58 = vsel %vm2017_vm2, %v2019_v51, %v2015_v53  ;;  %vm2028_vm5 = vmor %vm2026_vm4, %vm2027_vm3 }
 0xfed   :  { %v2023_v59 = vsub.f32 1.0, %v2022_v55  ;;  %v2038_v8 = vmul.f32 %v2036_v52, %v2020_v58 }
 0xfef   :  { %v2024_v62 = vmul.f32 %v2290_v48, %v2023_v59  ;;  %v2041_v3 = vadd.f32 %v2040_v38, %v2038_v8 }
 0xff1   :  { %v2025_v13 = vadd.f32 %v2290_v48, %v2024_v62  ;;  %2043 = vst.msk [vmem:[#allocation14] sm:$0xff] %vm144_vm0, %v2041_v3 }
 0xff3   :  { %v2029_v5 = vsel %vm2028_vm5, %v2290_v48, %v2025_v13 }
 0xff4   :  { %v2034_v6 = vsel %vm2031_vm6, %v2033_v0, %v2029_v5 }
 0xff5   :  { %v2039_v4 = vmul.f32 %v2037_v1, %v2034_v6 }
 0xff7   :  { %v2042_v7 = vadd.f32 %v2040_v38, %v2039_v4 }
 0xff9   :  { %2044 = vst.msk [vmem:[#allocation14 + $0x8] sm:$0xff] %vm144_vm0, %v2042_v7 }
 0xffa   :  { %2057 = dma.vmem_to_hbm [thread:$0]  %s2050_s11, 256, %s2052_s28, [#allocation8], %s3106_s30, %s3106_s30, %s2424_s1  }
 0xffb   :  { %2417 = dma.done.wait [#allocation8], 256  }
 0xffc   :  { %2418 = vsyncadd [#allocation8], 4294967040 }
 0xffd   :  { %2062 = vsyncpa [#allocation7], 1 }
 0xffe   :  { %2063 = vsyncpa [#allocation10], 1 }
 0xfff   :  { %2064 = vsyncpa [#allocation13], 1 }
0x1000   :  { %2065 = vsyncpa [#allocation8], 1 }

</bundles_post_ra>
